<compile_context>
chip_gen: v7x
topology: tpu7x:2x2x1
jax: 0.10.0
libtpu: 0.0.40
codegen_flags: <defaults>
</compile_context>

<pallas_src>
import functools

import jax
import jax.numpy as jnp
from jax.experimental import pallas as pl
from jax.experimental.pallas import tpu as pltpu

INPUT_SIZE = 784
NUM_CLASSES = 10


def _round_up(x: int, m: int) -> int:
    return ((x + m - 1) // m) * m


def logreg_kernel(x_ref, w_ref, b_ref, o_ref):
    # MXU matmul with f32 accumulation.
    logits = jnp.dot(x_ref[...], w_ref[...], preferred_element_type=jnp.float32)
    logits = logits + b_ref[...]  # broadcast [1, C] over [TB, C]
    # Numerically-stable softmax along the class axis (dim=1).
    m = jnp.max(logits, axis=-1, keepdims=True)
    e = jnp.exp(logits - m)
    denom = jnp.sum(e, axis=-1, keepdims=True)
    o_ref[...] = (e * pl.reciprocal(denom, approx=False)).astype(o_ref.dtype)


@functools.partial(jax.jit, static_argnames=("tb",))
def logistic_regression_forward(x, W, b, *, tb: int = 4096):
    B = x.shape[0]
    b2d = b.reshape(1, NUM_CLASSES)

    # Tile size: multiple of 8 (sublane), at most `tb`, no larger than needed.
    TB = min(tb, _round_up(B, 8))
    TB = _round_up(TB, 8)
    grid = (pl.cdiv(B, TB),)  # ragged last tile handled by Pallas masking

    # Scoped-VMEM budget: double-buffered x & out blocks + resident W/b + margin.
    x_block_bytes = TB * INPUT_SIZE * 4
    out_block_bytes = TB * NUM_CLASSES * 4
    w_bytes = INPUT_SIZE * NUM_CLASSES * 4 + NUM_CLASSES * 4
    needed = 2 * (x_block_bytes + out_block_bytes) + w_bytes
    vmem_limit = max(int(needed * 1.25) + (2 << 20), 32 << 20)

    cost = pl.CostEstimate(
        flops=2 * B * INPUT_SIZE * NUM_CLASSES,
        transcendentals=B * NUM_CLASSES,
        bytes_accessed=(B * INPUT_SIZE * 4
                        + INPUT_SIZE * NUM_CLASSES * 4
                        + NUM_CLASSES * 4
                        + B * NUM_CLASSES * 4),
    )

    return pl.pallas_call(
        logreg_kernel,
        out_shape=jax.ShapeDtypeStruct((B, NUM_CLASSES), x.dtype),
        grid=grid,
        in_specs=[
            pl.BlockSpec((TB, INPUT_SIZE), lambda i: (i, 0)),           # x: batch-tiled
            pl.BlockSpec((INPUT_SIZE, NUM_CLASSES), lambda i: (0, 0)),  # W: resident
            pl.BlockSpec((1, NUM_CLASSES), lambda i: (0, 0)),           # b: resident
        ],
        out_specs=pl.BlockSpec((TB, NUM_CLASSES), lambda i: (i, 0)),
        compiler_params=pltpu.CompilerParams(
            dimension_semantics=("parallel",),   # independent batch tiles -> both TCs on v7x
            vmem_limit_bytes=vmem_limit,
        ),
        cost_estimate=cost,
    )(x, W, b2d)


if __name__ == "__main__":
    key = jax.random.PRNGKey(0)
    kx, kw, kb = jax.random.split(key, 3)

    # Small demo shapes; B deliberately NOT a multiple of the tile so the
    # ragged-boundary-block path is exercised, and tb=128 so the grid has
    # multiple steps.
    B = 300
    x = jax.random.normal(kx, (B, INPUT_SIZE), dtype=jnp.float32)

    # Module __init__ uses zeros; use small random values here so the softmax
    # output is non-trivial (zeros would give uniform 0.1 everywhere).
    W = 0.01 * jax.random.normal(kw, (INPUT_SIZE, NUM_CLASSES), dtype=jnp.float32)
    b = 0.01 * jax.random.normal(kb, (NUM_CLASSES,), dtype=jnp.float32)

    out = logistic_regression_forward(x, W, b, tb=128)
    out = jax.block_until_ready(out)

    # Reference check in plain JAX (matches torch.softmax(x @ W + b, dim=1)).
    ref = jax.nn.softmax(x @ W + b, axis=1)
    assert out.shape == (B, NUM_CLASSES)
    assert jnp.allclose(out, ref, atol=1e-5, rtol=1e-5)
    assert jnp.allclose(jnp.sum(out, axis=1), 1.0, atol=1e-5)

    # Also sanity-check the default (production) tile size path.
    out2 = jax.block_until_ready(logistic_regression_forward(x, W, b))
    assert jnp.allclose(out2, ref, atol=1e-5, rtol=1e-5)

    print("KERNEL_OK")
</pallas_src>

<mosaic_0001>
module attributes {stable_mosaic.version = 11 : i64} {
  func.func @logreg_kernel(%arg0: i32, %arg1: memref<128x784xf32, #tpu.memory_space<vmem>>, %arg2: memref<784x10xf32, #tpu.memory_space<vmem>>, %arg3: memref<1x10xf32, #tpu.memory_space<vmem>>, %arg4: memref<128x10xf32, #tpu.memory_space<vmem>>) attributes {dimension_semantics = [#tpu.dimension_semantics<parallel>], iteration_bounds = array<i64: 3>, scalar_prefetch = 0 : i64, scratch_operands = 0 : i64, tpu.core_type = #tpu.core_type<tc>, window_params = [{transform_indices = @transform_0, window_bounds = array<i64: 128, 784>}, {pipeline_mode = #tpu.pipeline_mode<synchronous>, transform_indices = @transform_1, window_bounds = array<i64: 784, 10>}, {pipeline_mode = #tpu.pipeline_mode<synchronous>, transform_indices = @transform_2, window_bounds = array<i64: 1, 10>}, {transform_indices = @transform_3, window_bounds = array<i64: 128, 10>}]} {
    %c0 = arith.constant 0 : index
    %c0_0 = arith.constant 0 : index
    %0 = vector.load %arg1[%c0, %c0_0] : memref<128x784xf32, #tpu.memory_space<vmem>>, vector<128x784xf32>
    %c0_1 = arith.constant 0 : index
    %c0_2 = arith.constant 0 : index
    %1 = vector.load %arg2[%c0_1, %c0_2] : memref<784x10xf32, #tpu.memory_space<vmem>>, vector<784x10xf32>
    %cst = arith.constant dense<0.000000e+00> : vector<128x10xf32>
    %2 = tpu.matmul %0, %1, %cst {dimension_numbers = #tpu.dot_dimension_numbers<[1], [0], [0], [1], [0, 0, 1, 1], [], []>} : vector<128x784xf32>, vector<784x10xf32>, vector<128x10xf32> -> vector<128x10xf32>
    %c0_3 = arith.constant 0 : index
    %c0_4 = arith.constant 0 : index
    %3 = vector.load %arg3[%c0_3, %c0_4] : memref<1x10xf32, #tpu.memory_space<vmem>>, vector<1x10xf32>
    %4 = vector.broadcast %3 : vector<1x10xf32> to vector<128x10xf32>
    %5 = arith.addf %2, %4 : vector<128x10xf32>
    %cst_5 = arith.constant dense<0xFF800000> : vector<128xf32>
    %6 = vector.multi_reduction <maximumf>, %5, %cst_5 [1] : vector<128x10xf32> to vector<128xf32>
    %7 = vector.shape_cast %6 : vector<128xf32> to vector<128x1xf32>
    %8 = vector.broadcast %7 : vector<128x1xf32> to vector<128x10xf32>
    %9 = arith.subf %5, %8 : vector<128x10xf32>
    %10 = math.exp %9 : vector<128x10xf32>
    %cst_6 = arith.constant dense<0.000000e+00> : vector<128xf32>
    %11 = vector.multi_reduction <add>, %10, %cst_6 [1] : vector<128x10xf32> to vector<128xf32>
    %12 = vector.shape_cast %11 : vector<128xf32> to vector<128x1xf32>
    %13 = tpu.reciprocal %12 : vector<128x1xf32> -> vector<128x1xf32>
    %14 = vector.broadcast %13 : vector<128x1xf32> to vector<128x10xf32>
    %15 = arith.mulf %10, %14 : vector<128x10xf32>
    %c0_7 = arith.constant 0 : index
    %c0_8 = arith.constant 0 : index
    %16 = vector.load %arg4[%c0_7, %c0_8] : memref<128x10xf32, #tpu.memory_space<vmem>>, vector<128x10xf32>
    tpu.vector_store %arg4[%c0_7, %c0_8], %15 {strides = array<i32>} : memref<128x10xf32, #tpu.memory_space<vmem>>, vector<128x10xf32>,
    return
  }
  func.func @transform_0(%arg0: i32) -> (i32, i32) {
    %c0_i32 = arith.constant 0 : i32
    %c0_i32_0 = arith.constant 0 : i32
    return %arg0, %c0_i32 : i32, i32
  }
  func.func @transform_1(%arg0: i32) -> (i32, i32) {
    %c0_i32 = arith.constant 0 : i32
    %c0_i32_0 = arith.constant 0 : i32
    %c0_i32_1 = arith.constant 0 : i32
    return %c0_i32, %c0_i32_0 : i32, i32
  }
  func.func @transform_2(%arg0: i32) -> (i32, i32) {
    %c0_i32 = arith.constant 0 : i32
    %c0_i32_0 = arith.constant 0 : i32
    %c0_i32_1 = arith.constant 0 : i32
    return %c0_i32, %c0_i32_0 : i32, i32
  }
  func.func @transform_3(%arg0: i32) -> (i32, i32) {
    %c0_i32 = arith.constant 0 : i32
    %c0_i32_0 = arith.constant 0 : i32
    return %arg0, %c0_i32 : i32, i32
  }
}

</mosaic_0001>

<bundles_post_ra>
// kernel: logistic_regression_forward.1
= control target key start
LH: loop header
LB: loop body
LE: loop exit
PB: predicated region body
PF: predicated region fallthrough
CT: control target
= control target key end

     0   :  { %8 = vsyncpa [#allocation3], 0  ;;  %s3298_s0 = inlined_call_operand.hbm [shape: f32[300,784], index: 0, kind: input, shape index: {}]   ;;  %s3299_s1 = inlined_call_operand.vmem [shape: f32[784,10], index: 1, kind: input, shape index: {}]   ;;  %s3300_s2 = inlined_call_operand.hbm [shape: f32[1,10], index: 2, kind: input, shape index: {}]   ;;  %s3301_s3 = inlined_call_operand.vmem [shape: f32[300,10], index: 3, kind: output, shape index: {}]  }
   0x1   :  { %10 = vsyncpa [#allocation3 + $0x1], 0 }
   0x2   :  { %11 = vsyncpa [#allocation5], 0  ;;  %s2366_s12 = smov 0   ;;  %s2368_s13 = smov 0  }
   0x3   :  { %s2370_s14 = smov 0   ;;  %s2372_s15 = smov 0  }
   0x4 LB: > { %s2385_s16 = sadd.s32 4294967295, %s2308_s15   ;;  %s2388_s17 = sadd.s32 1, %s2308_s15   ;;  %s2308_s15 = sphi %s2372_s15, %s3322_s15   ;;  %s2304_s14 = sphi %s2370_s14, %s3321_s14   ;;  %s2300_s13 = sphi %s2368_s13, %s3320_s13   ;;  %s2296_s12 = sphi %s2366_s12, %s3319_s12  }
   0x5   : > { %s21_s18 = ssub.s32 %s2308_s15, %s2388_s17  ;;  %s24_s19 = sadd.s32 1, %s2304_s14 }
   0x6   : > { %p22_p0 = scmp.eq.s32.totalorder %s21_s18, 0  ;;  %p31_p1 = scmp.ne.s32.totalorder %s2304_s14, %s2300_s13 }
   0x7   : > { %p32_p2 = scmp.eq.s32.totalorder %s2308_s15, 0  ;;  %p37_p3 = scmp.ne.s32.totalorder %s2300_s13, %s2296_s12 }
   0x8   : > { %s2398_s20 = scalar_select %p22_p0, %s2304_s14, %s24_s19  }
   0x9   : > { %p2400_p4 = por %p32_p2, %p31_p1  ;;  %p3302_p5 = scmp.eq.s32.totalorder %s2385_s16, 0 }
   0xa   : > { %p103_p6 = scmp.eq.s32.totalorder %s2385_s16, 2  ;;  %p1553_p7 = scmp.ge.s32.totalorder %s2308_s15, 1 }
   0xb   : > { %s3305_s21 = scalar_select %p2400_p4, 1, 0 }
   0xc   : > { %p2409_p8 = por %p3302_p5, %p37_p3  ;;  %p116_p9 = scmp.lt.s32.totalorder %s2308_s15, 4 }
   0xd   : > { %p2414_p10 = por %p103_p6, %p31_p1  ;;  %s2342_s25 = smov [#allocation4]  }
   0xe   : > { %s3306_s22 = scalar_select %p2409_p8, 1, 0 }
   0xf   : > { %s3307_s23 = scalar_select %p2414_p10, 1, 0 }
  0x10   : > { %p2418_p11 = pnand %p1553_p7, %p116_p9  ;;  %s132_s26 = sshll.u32 %s2342_s25, 4  ;;  %s133_s26 = int_to_ptr.vmem [resolvable:$true] %s132_s26 }
  0x11   : > { %s2182_s30 = scalar_lea.hbm %s3300_s2, 16 }
  0x12   : > { %s3308_s24 = scalar_select %p2418_p11, 1, 0 }
  0x13   : > { %p2013_p12 = pneg %p2418_p11  ;;  %p2183_p0 = scmp.ne.s32.totalorder %s3300_s2, %s2182_s30 }
  0x14   : > { %p2189_p6 = scmp.lt.u32.totalorder %s2182_s30, %s3300_s2 }
  0x15   : > { %p2426_p13 = pnand %p2013_p12, %p3302_p5 }
  0x17   : > { %p2184_p1 = pneg %p2426_p13 }
  0x19   : > { %p2185_p2 = pnand %p2184_p1, %p2183_p0 }
  0x1b   : > { %p2186_p3 = pneg %p2185_p2 }
  0x1d   : > { %p2191_p7 = pnand %p2189_p6, %p2186_p3 }
  0x1f   : > { %2194 = shalt.err (!%p2191_p7)
}
  0x20   : > { %s2195_s8 = scalar_lea.vmem %s133_s26, 16  ;;  %s2202_s9 = scalar_lea.vmem %s133_s26, 32 }
  0x21   : > { %p2196_p9 = scmp.ne.s32.totalorder %s133_s26, %s2195_s8  ;;  %p2203_p10 = scmp.lt.s32.totalorder %s133_s26, %s133_s26 }
  0x22   : > { %p2204_p8 = scmp.lt.s32.totalorder %s2202_s9, %s2195_s8 }
  0x23   : > { %p2198_p12 = pnand %p2196_p9, %p2184_p1 }
  0x24   : > { %p2205_p11 = por %p2204_p8, %p2203_p10 }
  0x25   : > { %p2199_p5 = pneg %p2198_p12 }
  0x27   : > { %p2206_p4 = pnand %p2205_p11, %p2199_p5 }
  0x29   : > { %2209 = shalt.err (!%p2206_p4)
}
  0x2a   : > { %2016 = dma.hbm_to_vmem [thread:$0]  (!%p2426_p13), %s3300_s2, 16, %s133_s26, [#allocation5]  }
  0x2b   : > { %p1555_p0 = scmp.ge.s32.totalorder %s2308_s15, 3 }
  0x2c   : > { %p3310_p2 = scmp.ne.s32.totalorder (!%p1555_p0), %s3305_s21, 0 }
  0x2d   : > { %139 = sbr.rel (%p1555_p0) target bundleno = 88 (0x58), region = 24 }
  0x34   : > { %142 = sbr.rel (!%p3310_p2) target bundleno = 88 (0x58), region = 28  ;;  %s143_s12 = sand.u32 (%p3310_p2), 1, %s2304_s14  }
  0x35   : > { %s1556_s18 = sshll.u32 (%p3310_p2), %s2308_s15, 4  ;;  %s2005_s19 = smul.u32 (%p3310_p2), 896, %s143_s12 }
  0x36   : > { %s149_s25 = ssub.s32 (%p3310_p2), 38, %s1556_s18  ;;  %s2454_s29 = scalar_lea.sflag (%p3310_p2), [#allocation3], %s143_s12 }
  0x37   : > { %p150_p5 = scmp.lt.s32.totalorder (%p3310_p2), %s149_s25, 16  ;;  %s147_s26 = scalar_lea.vmem (%p3310_p2), [#allocation2], %s2005_s19 }
  0x3b   : > { %s3324_s25 = smov (!%p150_p5, %s149_s25), 16 }
  0x3c   : > { %s2451_s28 = smul.u32 896, %s3324_s25 }
  0x3e   : > { %s155_s27 = ssub.s32 14336, %s2451_s28 }
  0x3f   : > { %156 = vsyncadd %s2454_s29, %s155_s27  ;;  %p1559_p4 = scmp.ne.s32.totalorder %s2451_s28, 0  ;;  %s2006_s21 = smul.u32 14336, %s2308_s15 }
  0x40   : > { %s162_s30 = sshll.u32 %s147_s26, 4  ;;  %s2214_s15 = scalar_lea.hbm %s3298_s0, 34048  ;;  %s2464_s30 = int_to_ptr.vmem [resolvable:$true] %s162_s30 }
  0x41   : > { %s2462_s6 = scalar_lea.hbm %s3298_s0, %s2006_s21 }
  0x42   : > { %s2210_s7 = scalar_lea.hbm %s2462_s6, %s2451_s28  ;;  %p2215_p13 = scmp.lt.u32.totalorder %s2462_s6, %s3298_s0 }
  0x43   : > { %p2211_p8 = scmp.ne.s32.totalorder %s2462_s6, %s2210_s7  ;;  %p2216_p1 = scmp.lt.u32.totalorder %s2214_s15, %s2210_s7 }
  0x44   : > { %p2218_p6 = scmp.lt.u32.totalorder %s2210_s7, %s2462_s6 }
  0x45   : > { %p2212_p10 = pnand %p2211_p8, %p1559_p4  ;;  %p2217_p3 = por %p2216_p1, %p2215_p13 }
  0x47   : > { %p2213_p11 = pneg %p2212_p10  ;;  %p2219_p7 = por %p2218_p6, %p2217_p3 }
  0x49   : > { %p2220_p9 = pnand %p2219_p7, %p2213_p11 }
  0x4b   : > { %2223 = shalt.err (!%p2220_p9)
}
  0x4c   : > { %s2224_s12 = scalar_lea.vmem %s2464_s30, %s2451_s28  ;;  %s2343_s18 = smov [#allocation2]  }
  0x4d   : > { %p2225_p12 = scmp.ne.s32.totalorder %s2464_s30, %s2224_s12  ;;  %s2228_s19 = sshll.u32 %s2343_s18, 4  ;;  %s2229_s19 = int_to_ptr.vmem [resolvable:$false] %s2228_s19 }
  0x4e   : > { %s2230_s25 = scalar_lea.vmem %s2229_s19, 28672  ;;  %p2231_p5 = scmp.lt.s32.totalorder %s2464_s30, %s2229_s19 }
  0x4f   : > { %p2226_p0 = pnand %p2225_p12, %p1559_p4  ;;  %p2232_p8 = scmp.lt.s32.totalorder %s2230_s25, %s2224_s12 }
  0x51   : > { %p2227_p2 = pneg %p2226_p0  ;;  %p2233_p10 = por %p2232_p8, %p2231_p5 }
  0x53   : > { %p2234_p13 = pnand %p2233_p10, %p2227_p2 }
  0x55   : > { %2237 = shalt.err (!%p2234_p13)
}
  0x56   : > { %s2344_s27 = smov 896   ;;  %s2345_s26 = smov 56  }
  0x57   : > { %168 = dma.hbm_to_vmem [thread:$0]  (%p1559_p4), %s2462_s6, %s2451_s28, %s2464_s30, %s2454_s29, %s2344_s27, %s2344_s27, %s2345_s26  }
  0x58 PF: > { %p3311_p11 = scmp.ne.s32.totalorder %s3308_s24, 0 }
  0x59   : > { %s2494_s21 = sand.u32 (!%p3311_p11), 1, %s2300_s13   ;;  %p3312_p1 = scmp.ne.s32.totalorder (!%p3311_p11), %s3306_s22, 0 }
  0x5a   : > { %174 = sbr.rel (%p3311_p11) target bundleno = 832 (0x340), region = 32  ;;  %s177_s5 = scalar_lea.sflag (!%p3311_p11), [#allocation3], %s2494_s21 }
  0x5b   : > { %s2007_s4 = smul.u32 (!%p3311_p11), 896, %s2494_s21 }
  0x5d   : > { %s2498_s7 = scalar_lea.vmem (!%p3311_p11), [#allocation2], %s2007_s4 }
  0x61   : > { %2287 = dma.done.wait (%p3312_p1), %s177_s5, 14336  }
  0x62   : > { %2289 = vsyncadd (%p3312_p1), %s177_s5, 4294952960  ;;  %p3313_p4 = scmp.eq.s32.totalorder %s2385_s16, 0 }
  0x64   : > { %2291 = dma.done.wait (%p3313_p4), [#allocation5], 16   ;;  %p3314_p3 = pmov %p3313_p4 }
  0x65   : > { %v345_v0 = vld [vmem:[%s3299_s1 + $0x80] sm:$0xff]  ;;  %v346_v1 = vld [vmem:[%s3299_s1 + $0x88] sm:$0xff]  ;;  %v347_v11 = vld [vmem:[%s3299_s1 + $0x90] sm:$0xff]  ;;  %vm434_vm0 = vcmask 130048   ;;  %vm1063_vm1 = vcmask 80896   ;;  %p3315_p6 = scmp.ne.s32.totalorder %s3307_s23, 0 }
  0x66   : > { %2293 = vsyncadd (%p3314_p3), [#allocation5], 4294967280  ;;  %v377_v2 = vld [vmem:[%s3299_s1 + $0x180] sm:$0xff]  ;;  %v1889_v3 = vpack.c.bf16 %v346_v1, %v345_v0  ;;  %v378_v4 = vld [vmem:[%s3299_s1 + $0x188] sm:$0xff]  ;;  %s1600_s9 = sshll.u32 (%p3315_p6), %s2385_s16, 7 }
  0x67   : > { %v329_v5 = vld [vmem:[%s3299_s1] sm:$0xff]  ;;  %v330_v6 = vld [vmem:[%s3299_s1 + $0x8] sm:$0xff]  ;;  %v1921_v7 = vpack.c.bf16 %v378_v4, %v377_v2  ;;  %v348_v13 = vld [vmem:[%s3299_s1 + $0x98] sm:$0xff]  ;;  %s3202_s12 = scalar_lea.vmem (%p3315_p6), %s3301_s3, %s1600_s9  }
  0x68   : > { %v1891_v8 = vpack.c.bf16 %v330_v6, %v329_v5  ;;  %v361_v9 = vld [vmem:[%s3299_s1 + $0x100] sm:$0xff]  ;;  %v362_v10 = vld [vmem:[%s3299_s1 + $0x108] sm:$0xff]  ;;  %1890 = vmatprep.subr.bf16.mxu0 %v1889_v3  ;;  %v379_v14 = vld [vmem:[%s3299_s1 + $0x190] sm:$0xff]  ;;  %v1893_v16 = vpack.c.bf16 %v348_v13, %v347_v11 }
  0x69   : > { %v1923_v12 = vpack.c.bf16 %v362_v10, %v361_v9  ;;  %v380_v15 = vld [vmem:[%s3299_s1 + $0x198] sm:$0xff]  ;;  %1922 = vmatprep.subr.bf16.mxu1 %v1921_v7  ;;  %v331_v18 = vld [vmem:[%s3299_s1 + $0x10] sm:$0xff]  ;;  %v349_v23 = vld [vmem:[%s3299_s1 + $0xa0] sm:$0xff] }
  0x6a   : > { %1892 = vmatpush3.bf16.msra.mxu0 %v1891_v8  ;;  %v1925_v17 = vpack.c.bf16 %v380_v15, %v379_v14  ;;  %v332_v19 = vld [vmem:[%s3299_s1 + $0x18] sm:$0xff]  ;;  %v363_v20 = vld [vmem:[%s3299_s1 + $0x110] sm:$0xff]  ;;  %v350_v24 = vld [vmem:[%s3299_s1 + $0xa8] sm:$0xff] }
  0x6b   : > { %1924 = vmatpush3.bf16.msra.mxu1 %v1923_v12  ;;  %v1895_v21 = vpack.c.bf16 %v332_v19, %v331_v18  ;;  %v364_v22 = vld [vmem:[%s3299_s1 + $0x118] sm:$0xff]  ;;  %1894 = vmatprep.subr.bf16.mxu0 %v1893_v16  ;;  %v1897_v26 = vpack.c.bf16 %v350_v24, %v349_v23  ;;  %v381_v27 = vld [vmem:[%s3299_s1 + $0x1a0] sm:$0xff]  ;;  %v382_v28 = vld [vmem:[%s3299_s1 + $0x1a8] sm:$0xff] }
  0x6c   : > { %1926 = vmatprep.subr.bf16.mxu1 %v1925_v17  ;;  %v1927_v25 = vpack.c.bf16 %v364_v22, %v363_v20  ;;  %v333_v29 = vld [vmem:[%s3299_s1 + $0x20] sm:$0xff]  ;;  %v1929_v30 = vpack.c.bf16 %v382_v28, %v381_v27  ;;  %v334_v31 = vld [vmem:[%s3299_s1 + $0x28] sm:$0xff]  ;;  %v351_v35 = vld [vmem:[%s3299_s1 + $0xb0] sm:$0xff] }
  0x6d   : > { %v365_v32 = vld [vmem:[%s3299_s1 + $0x120] sm:$0xff]  ;;  %v366_v33 = vld [vmem:[%s3299_s1 + $0x128] sm:$0xff]  ;;  %v1899_v34 = vpack.c.bf16 %v334_v31, %v333_v29  ;;  %v352_v36 = vld [vmem:[%s3299_s1 + $0xb8] sm:$0xff] }
  0x6e   : > { %1896 = vmatpush3.bf16.msra.mxu0 %v1895_v21  ;;  %v383_v37 = vld [vmem:[%s3299_s1 + $0x1b0] sm:$0xff]  ;;  %v1931_v38 = vpack.c.bf16 %v366_v33, %v365_v32  ;;  %v1901_v39 = vpack.c.bf16 %v352_v36, %v351_v35  ;;  %v384_v40 = vld [vmem:[%s3299_s1 + $0x1b8] sm:$0xff]  ;;  %v353_v46 = vld [vmem:[%s3299_s1 + $0xc0] sm:$0xff] }
  0x6f   : > { %1928 = vmatpush3.bf16.msra.mxu1 %v1927_v25  ;;  %1898 = vmatprep.subr.bf16.mxu0 %v1897_v26  ;;  %v335_v41 = vld [vmem:[%s3299_s1 + $0x30] sm:$0xff]  ;;  %v336_v42 = vld [vmem:[%s3299_s1 + $0x38] sm:$0xff]  ;;  %v1933_v43 = vpack.c.bf16 %v384_v40, %v383_v37  ;;  %v354_v47 = vld [vmem:[%s3299_s1 + $0xc8] sm:$0xff] }
  0x70   : > { %1930 = vmatprep.subr.bf16.mxu1 %v1929_v30  ;;  %v367_v44 = vld [vmem:[%s3299_s1 + $0x130] sm:$0xff]  ;;  %v368_v45 = vld [vmem:[%s3299_s1 + $0x138] sm:$0xff]  ;;  %v385_v48 = vld [vmem:[%s3299_s1 + $0x1c0] sm:$0xff]  ;;  %v1903_v50 = vpack.c.bf16 %v336_v42, %v335_v41  ;;  %v1905_v52 = vpack.c.bf16 %v354_v47, %v353_v46 }
  0x71   : > { %v386_v49 = vld [vmem:[%s3299_s1 + $0x1c8] sm:$0xff]  ;;  %v1935_v51 = vpack.c.bf16 %v368_v45, %v367_v44  ;;  %v337_v53 = vld [vmem:[%s3299_s1 + $0x40] sm:$0xff]  ;;  %v355_v58 = vld [vmem:[%s3299_s1 + $0xd0] sm:$0xff] }
  0x72   : > { %1900 = vmatpush3.bf16.msra.mxu0 %v1899_v34  ;;  %v338_v54 = vld [vmem:[%s3299_s1 + $0x48] sm:$0xff]  ;;  %v369_v55 = vld [vmem:[%s3299_s1 + $0x140] sm:$0xff]  ;;  %v1937_v56 = vpack.c.bf16 %v386_v49, %v385_v48  ;;  %v356_v59 = vld [vmem:[%s3299_s1 + $0xd8] sm:$0xff] }
  0x73   : > { %1932 = vmatpush3.bf16.msra.mxu1 %v1931_v38  ;;  %1902 = vmatprep.subr.bf16.mxu0 %v1901_v39  ;;  %v370_v57 = vld [vmem:[%s3299_s1 + $0x148] sm:$0xff]  ;;  %v387_v60 = vld [vmem:[%s3299_s1 + $0x1d0] sm:$0xff]  ;;  %v388_v61 = vld [vmem:[%s3299_s1 + $0x1d8] sm:$0xff]  ;;  %v1907_v62 = vpack.c.bf16 %v338_v54, %v337_v53  ;;  %v1909_v0 = vpack.c.bf16 %v356_v59, %v355_v58 }
  0x74   : > { %1934 = vmatprep.subr.bf16.mxu1 %v1933_v43  ;;  %v1939_v63 = vpack.c.bf16 %v370_v57, %v369_v55  ;;  %v339_v1 = vld [vmem:[%s3299_s1 + $0x50] sm:$0xff]  ;;  %v340_v2 = vld [vmem:[%s3299_s1 + $0x58] sm:$0xff]  ;;  %v1941_v4 = vpack.c.bf16 %v388_v61, %v387_v60  ;;  %v357_v6 = vld [vmem:[%s3299_s1 + $0xe0] sm:$0xff] }
  0x75   : > { %v371_v3 = vld [vmem:[%s3299_s1 + $0x150] sm:$0xff]  ;;  %v372_v5 = vld [vmem:[%s3299_s1 + $0x158] sm:$0xff]  ;;  %v358_v7 = vld [vmem:[%s3299_s1 + $0xe8] sm:$0xff]  ;;  %v1911_v10 = vpack.c.bf16 %v340_v2, %v339_v1 }
  0x76   : > { %1904 = vmatpush3.bf16.msra.mxu0 %v1903_v50  ;;  %v389_v8 = vld [vmem:[%s3299_s1 + $0x1e0] sm:$0xff]  ;;  %v390_v9 = vld [vmem:[%s3299_s1 + $0x1e8] sm:$0xff]  ;;  %v1943_v13 = vpack.c.bf16 %v372_v5, %v371_v3  ;;  %v1913_v14 = vpack.c.bf16 %v358_v7, %v357_v6  ;;  %v220_v17 = vld [vmem:[%s2498_s7 + $0x18] sm:$0xff] }
  0x77   : > { %1936 = vmatpush3.bf16.msra.mxu1 %v1935_v51  ;;  %1906 = vmatprep.subr.bf16.mxu0 %v1905_v52  ;;  %v341_v11 = vld [vmem:[%s3299_s1 + $0x60] sm:$0xff]  ;;  %v342_v12 = vld [vmem:[%s3299_s1 + $0x68] sm:$0xff]  ;;  %v1945_v18 = vpack.c.bf16 %v390_v9, %v389_v8  ;;  %v359_v20 = vld [vmem:[%s3299_s1 + $0xf0] sm:$0xff] }
  0x78   : > { %1938 = vmatprep.subr.bf16.mxu1 %v1937_v56  ;;  %v373_v15 = vld [vmem:[%s3299_s1 + $0x160] sm:$0xff]  ;;  %v218_v16 = vld [vmem:[%s2498_s7 + $0x8] sm:$0xff]  ;;  %v360_v21 = vld [vmem:[%s3299_s1 + $0xf8] sm:$0xff]  ;;  %692 = vmatprep.mubr.f32.mxu1 %v220_v17  ;;  %v1915_v24 = vpack.c.bf16 %v342_v12, %v341_v11 }
  0x79   : > { %v374_v19 = vld [vmem:[%s3299_s1 + $0x168] sm:$0xff]  ;;  %547 = vmatprep.mubr.f32.mxu0 %v218_v16  ;;  %v391_v22 = vld [vmem:[%s3299_s1 + $0x1f0] sm:$0xff]  ;;  %v392_v23 = vld [vmem:[%s3299_s1 + $0x1f8] sm:$0xff]  ;;  %v1917_v26 = vpack.c.bf16 %v360_v21, %v359_v20 }
  0x7a   : > { %1908 = vmatpush3.bf16.msra.mxu0 %v1907_v62  ;;  %v1947_v25 = vpack.c.bf16 %v374_v19, %v373_v15  ;;  %v343_v27 = vld [vmem:[%s3299_s1 + $0x70] sm:$0xff]  ;;  %v344_v28 = vld [vmem:[%s3299_s1 + $0x78] sm:$0xff]  ;;  %v1949_v30 = vpack.c.bf16 %v392_v23, %v391_v22  ;;  %v409_v32 = vld [vmem:[%s3299_s1 + $0x280] sm:$0xff] }
  0x7b   : > { %1940 = vmatpush3.bf16.msra.mxu1 %v1939_v63  ;;  %1910 = vmatprep.subr.bf16.mxu0 %v1909_v0  ;;  %v375_v29 = vld [vmem:[%s3299_s1 + $0x170] sm:$0xff]  ;;  %v376_v31 = vld [vmem:[%s3299_s1 + $0x178] sm:$0xff]  ;;  %v410_v33 = vld [vmem:[%s3299_s1 + $0x288] sm:$0xff]  ;;  %v1919_v34 = vpack.c.bf16 %v344_v28, %v343_v27 }
  0x7c   : > { %1942 = vmatprep.subr.bf16.mxu1 %v1941_v4  ;;  %v1951_v35 = vpack.c.bf16 %v376_v31, %v375_v29  ;;  %v1953_v36 = vpack.c.bf16 %v410_v33, %v409_v32  ;;  %v393_v37 = vld [vmem:[%s3299_s1 + $0x200] sm:$0xff]  ;;  %v394_v38 = vld [vmem:[%s3299_s1 + $0x208] sm:$0xff]  ;;  %v411_v39 = vld [vmem:[%s3299_s1 + $0x290] sm:$0xff] }
  0x7d   : > { %v412_v40 = vld [vmem:[%s3299_s1 + $0x298] sm:$0xff]  ;;  %v217_v41 = vld [vmem:[%s2498_s7] sm:$0xff]  ;;  %v1955_v42 = vpack.c.bf16 %v394_v38, %v393_v37  ;;  %v219_v43 = vld [vmem:[%s2498_s7 + $0x10] sm:$0xff] }
  0x7e   : > { %1912 = vmatpush3.bf16.msra.mxu0 %v1911_v10  ;;  %v225_v44 = vld [vmem:[%s2498_s7 + $0x40] sm:$0xff]  ;;  %v1957_v45 = vpack.c.bf16 %v412_v40, %v411_v39  ;;  %v395_v46 = vld [vmem:[%s3299_s1 + $0x210] sm:$0xff]  ;;  %v396_v47 = vld [vmem:[%s3299_s1 + $0x218] sm:$0xff] }
  0x7f   : > { %1944 = vmatpush3.bf16.msra.mxu1 %v1943_v13  ;;  %1914 = vmatprep.subr.bf16.mxu0 %v1913_v14  ;;  %v227_v48 = vld [vmem:[%s2498_s7 + $0x50] sm:$0xff]  ;;  %v413_v49 = vld [vmem:[%s3299_s1 + $0x2a0] sm:$0xff]  ;;  %v414_v50 = vld [vmem:[%s3299_s1 + $0x2a8] sm:$0xff]  ;;  %v1959_v54 = vpack.c.bf16 %v396_v47, %v395_v46 }
  0x80   : > { %1946 = vmatprep.subr.bf16.mxu1 %v1945_v18  ;;  %v224_v51 = vld [vmem:[%s2498_s7 + $0x38] sm:$0xff]  ;;  %v226_v52 = vld [vmem:[%s2498_s7 + $0x48] sm:$0xff]  ;;  %v1961_v56 = vpack.c.bf16 %v414_v50, %v413_v49  ;;  %v397_v57 = vld [vmem:[%s3299_s1 + $0x220] sm:$0xff] }
  0x81   : > { %v232_v53 = vld [vmem:[%s2498_s7 + $0x78] sm:$0xff]  ;;  %v234_v55 = vld [vmem:[%s2498_s7 + $0x88] sm:$0xff]  ;;  %v415_v59 = vld [vmem:[%s3299_s1 + $0x2b0] sm:$0xff] }
  0x82   : > { %1916 = vmatpush3.bf16.msra.mxu0 %v1915_v24  ;;  %v398_v58 = vld [vmem:[%s3299_s1 + $0x228] sm:$0xff]  ;;  %v416_v60 = vld [vmem:[%s3299_s1 + $0x2b8] sm:$0xff]  ;;  %v231_v61 = vld [vmem:[%s2498_s7 + $0x70] sm:$0xff] }
  0x83   : > { %1948 = vmatpush3.bf16.msra.mxu1 %v1947_v25  ;;  %1918 = vmatprep.subr.bf16.mxu0 %v1917_v26  ;;  %v233_v62 = vld [vmem:[%s2498_s7 + $0x80] sm:$0xff]  ;;  %v239_v63 = vld [vmem:[%s2498_s7 + $0xb0] sm:$0xff]  ;;  %v1963_v0 = vpack.c.bf16 %v398_v58, %v397_v57  ;;  %v1965_v2 = vpack.c.bf16 %v416_v60, %v415_v59  ;;  %v400_v4 = vld [vmem:[%s3299_s1 + $0x238] sm:$0xff] }
  0x84   : > { %1950 = vmatprep.subr.bf16.mxu1 %v1949_v30  ;;  %v241_v1 = vld [vmem:[%s2498_s7 + $0xc0] sm:$0xff]  ;;  %v399_v3 = vld [vmem:[%s3299_s1 + $0x230] sm:$0xff]  ;;  %v418_v6 = vld [vmem:[%s3299_s1 + $0x2c8] sm:$0xff] }
  0x85   : > { %v417_v5 = vld [vmem:[%s3299_s1 + $0x2c0] sm:$0xff]  ;;  %v238_v7 = vld [vmem:[%s2498_s7 + $0xa8] sm:$0xff]  ;;  %v240_v8 = vld [vmem:[%s2498_s7 + $0xb8] sm:$0xff]  ;;  %v1967_v10 = vpack.c.bf16 %v400_v4, %v399_v3 }
  0x86   : > { %1920 = vmatpush3.bf16.msra.mxu0 %v1919_v34  ;;  %v246_v9 = vld [vmem:[%s2498_s7 + $0xe8] sm:$0xff]  ;;  %v248_v11 = vld [vmem:[%s2498_s7 + $0xf8] sm:$0xff]  ;;  %v1969_v12 = vpack.c.bf16 %v418_v6, %v417_v5  ;;  %v401_v13 = vld [vmem:[%s3299_s1 + $0x240] sm:$0xff] }
  0x87   : > { %1952 = vmatpush3.bf16.msra.mxu1 %v1951_v35  ;;  %1954 = vmatprep.subr.bf16.mxu0 %v1953_v36  ;;  %v402_v14 = vld [vmem:[%s3299_s1 + $0x248] sm:$0xff]  ;;  %v419_v15 = vld [vmem:[%s3299_s1 + $0x2d0] sm:$0xff]  ;;  %v420_v16 = vld [vmem:[%s3299_s1 + $0x2d8] sm:$0xff] }
  0x88   : > { %1989 = vmatprep.subr.bf16.mxu1 %v1953_v36  ;;  %v245_v17 = vld [vmem:[%s2498_s7 + $0xe0] sm:$0xff]  ;;  %v247_v18 = vld [vmem:[%s2498_s7 + $0xf0] sm:$0xff]  ;;  %v1971_v20 = vpack.c.bf16 %v402_v14, %v401_v13  ;;  %v1973_v22 = vpack.c.bf16 %v420_v16, %v419_v15  ;;  %v404_v24 = vld [vmem:[%s3299_s1 + $0x258] sm:$0xff] }
  0x89   : > { %548 = vmatmul.mubr.f32.vlgmr.msra.gmra.mrb[0].mxu0 %v217_v41  ;;  %v253_v19 = vld [vmem:[%s2498_s7 + $0x120] sm:$0xff]  ;;  %v255_v21 = vld [vmem:[%s2498_s7 + $0x130] sm:$0xff]  ;;  %v422_v26 = vld [vmem:[%s3299_s1 + $0x2e8] sm:$0xff] }
  0x8a   : > { %693 = vmatmul.mubr.f32.vlgmr.msra.gmra.mrb[0].mxu1 %v219_v43  ;;  %1956 = vmatpush3.bf16.msra.mxu0 %v1955_v42  ;;  %v403_v23 = vld [vmem:[%s3299_s1 + $0x250] sm:$0xff]  ;;  %v421_v25 = vld [vmem:[%s3299_s1 + $0x2e0] sm:$0xff]  ;;  %v252_v27 = vld [vmem:[%s2498_s7 + $0x118] sm:$0xff] }
  0x8b   : > { %1997 = vmatpush3.bf16.msra.mxu1 %v1955_v42  ;;  %552 = vmatprep.mubr.f32.mxu0 %v225_v44  ;;  %v254_v28 = vld [vmem:[%s2498_s7 + $0x128] sm:$0xff]  ;;  %v260_v29 = vld [vmem:[%s2498_s7 + $0x158] sm:$0xff]  ;;  %v1975_v30 = vpack.c.bf16 %v404_v24, %v403_v23  ;;  %v1977_v32 = vpack.c.bf16 %v422_v26, %v421_v25  ;;  %v405_v33 = vld [vmem:[%s3299_s1 + $0x260] sm:$0xff] }
  0x8c   : > { %697 = vmatprep.mubr.f32.mxu1 %v227_v48  ;;  %1958 = vmatprep.subr.bf16.mxu0 %v1957_v45  ;;  %v262_v31 = vld [vmem:[%s2498_s7 + $0x168] sm:$0xff]  ;;  %v423_v35 = vld [vmem:[%s3299_s1 + $0x2f0] sm:$0xff]  ;;  %v424_v36 = vld [vmem:[%s3299_s1 + $0x2f8] sm:$0xff] }
  0x8d   : > { %553 = vmatmul.mubr.f32.gmra.mrb[2].mxu0 %v224_v51  ;;  %1990 = vmatprep.subr.bf16.mxu1 %v1957_v45  ;;  %v406_v34 = vld [vmem:[%s3299_s1 + $0x268] sm:$0xff]  ;;  %v259_v37 = vld [vmem:[%s2498_s7 + $0x150] sm:$0xff]  ;;  %v261_v38 = vld [vmem:[%s2498_s7 + $0x160] sm:$0xff]  ;;  %v1981_v42 = vpack.c.bf16 %v424_v36, %v423_v35 }
  0x8e   : > { %698 = vmatmul.mubr.f32.gmra.mrb[2].mxu1 %v226_v52  ;;  %557 = vmatprep.mubr.f32.mxu0 %v232_v53  ;;  %v267_v39 = vld [vmem:[%s2498_s7 + $0x190] sm:$0xff]  ;;  %v1979_v40 = vpack.c.bf16 %v406_v34, %v405_v33  ;;  %v269_v41 = vld [vmem:[%s2498_s7 + $0x1a0] sm:$0xff]  ;;  %v408_v44 = vld [vmem:[%s3299_s1 + $0x278] sm:$0xff] }
  0x8f   : > { %702 = vmatprep.mubr.f32.mxu1 %v234_v55  ;;  %1960 = vmatpush3.bf16.msra.mxu0 %v1959_v54  ;;  %v407_v43 = vld [vmem:[%s3299_s1 + $0x270] sm:$0xff]  ;;  %v266_v45 = vld [vmem:[%s2498_s7 + $0x188] sm:$0xff]  ;;  %v425_v46 = vld [vmem:[%s3299_s1 + $0x300] sm:$0xff] }
  0x90   : > { %1998 = vmatpush3.bf16.msra.mxu1 %v1959_v54  ;;  %1962 = vmatprep.subr.bf16.mxu0 %v1961_v56  ;;  %v426_v47 = vld [vmem:[%s3299_s1 + $0x308] sm:$0xff]  ;;  %v268_v48 = vld [vmem:[%s2498_s7 + $0x198] sm:$0xff]  ;;  %v1983_v50 = vpack.c.bf16 %v408_v44, %v407_v43  ;;  %v273_v53 = vld [vmem:[%s2498_s7 + $0x1c0] sm:$0xff] }
  0x91   : > { %558 = vmatmul.mubr.f32.gmra.mrb[4].mxu0 %v231_v61  ;;  %1991 = vmatprep.subr.bf16.mxu1 %v1961_v56  ;;  %v274_v49 = vld [vmem:[%s2498_s7 + $0x1c8] sm:$0xff]  ;;  %v276_v51 = vld [vmem:[%s2498_s7 + $0x1d8] sm:$0xff]  ;;  %v2836_v52 = vpack.c.bf16 %v426_v47, %v425_v46  ;;  %v275_v54 = vld [vmem:[%s2498_s7 + $0x1d0] sm:$0xff] }
  0x92   : > { %703 = vmatmul.mubr.f32.gmra.mrb[4].mxu1 %v233_v62  ;;  %562 = vmatprep.mubr.f32.mxu0 %v239_v63  ;;  %v281_v55 = vld [vmem:[%s2498_s7 + $0x200] sm:$0xff]  ;;  %v283_v56 = vld [vmem:[%s2498_s7 + $0x210] sm:$0xff]  ;;  %v280_v57 = vld [vmem:[%s2498_s7 + $0x1f8] sm:$0xff] }
  0x93   : > { %707 = vmatprep.mubr.f32.mxu1 %v241_v1  ;;  %1964 = vmatpush3.bf16.msra.mxu0 %v1963_v0  ;;  %v282_v58 = vld [vmem:[%s2498_s7 + $0x208] sm:$0xff]  ;;  %v288_v59 = vld [vmem:[%s2498_s7 + $0x238] sm:$0xff]  ;;  %v287_v61 = vld [vmem:[%s2498_s7 + $0x230] sm:$0xff] }
  0x94   : > { %1999 = vmatpush3.bf16.msra.mxu1 %v1963_v0  ;;  %1966 = vmatprep.subr.bf16.mxu0 %v1965_v2  ;;  %v290_v60 = vld [vmem:[%s2498_s7 + $0x248] sm:$0xff]  ;;  %v289_v62 = vld [vmem:[%s2498_s7 + $0x240] sm:$0xff]  ;;  %v295_v63 = vld [vmem:[%s2498_s7 + $0x270] sm:$0xff] }
  0x95   : > { %563 = vmatmul.mubr.f32.gmra.mrb[6].mxu0 %v238_v7  ;;  %1992 = vmatprep.subr.bf16.mxu1 %v1965_v2  ;;  %v297_v0 = vld [vmem:[%s2498_s7 + $0x280] sm:$0xff]  ;;  %v294_v1 = vld [vmem:[%s2498_s7 + $0x268] sm:$0xff]  ;;  %v296_v2 = vld [vmem:[%s2498_s7 + $0x278] sm:$0xff] }
  0x96   : > { %708 = vmatmul.mubr.f32.gmra.mrb[6].mxu1 %v240_v8  ;;  %567 = vmatprep.mubr.f32.mxu0 %v246_v9  ;;  %v302_v3 = vld [vmem:[%s2498_s7 + $0x2a8] sm:$0xff]  ;;  %v304_v4 = vld [vmem:[%s2498_s7 + $0x2b8] sm:$0xff]  ;;  %v301_v5 = vld [vmem:[%s2498_s7 + $0x2a0] sm:$0xff] }
  0x97   : > { %712 = vmatprep.mubr.f32.mxu1 %v248_v11  ;;  %1968 = vmatpush3.bf16.msra.mxu0 %v1967_v10  ;;  %v303_v6 = vld [vmem:[%s2498_s7 + $0x2b0] sm:$0xff]  ;;  %v309_v7 = vld [vmem:[%s2498_s7 + $0x2e0] sm:$0xff]  ;;  %v308_v9 = vld [vmem:[%s2498_s7 + $0x2d8] sm:$0xff] }
  0x98   : > { %2000 = vmatpush3.bf16.msra.mxu1 %v1967_v10  ;;  %1970 = vmatprep.subr.bf16.mxu0 %v1969_v12  ;;  %v311_v8 = vld [vmem:[%s2498_s7 + $0x2f0] sm:$0xff]  ;;  %v310_v10 = vld [vmem:[%s2498_s7 + $0x2e8] sm:$0xff]  ;;  %v316_v11 = vld [vmem:[%s2498_s7 + $0x318] sm:$0xff] }
  0x99   : > { %568 = vmatmul.mubr.f32.gmra.mrb[8].mxu0 %v245_v17  ;;  %1993 = vmatprep.subr.bf16.mxu1 %v1969_v12  ;;  %v318_v12 = vld [vmem:[%s2498_s7 + $0x328] sm:$0xff]  ;;  %v315_v13 = vld [vmem:[%s2498_s7 + $0x310] sm:$0xff]  ;;  %v317_v14 = vld [vmem:[%s2498_s7 + $0x320] sm:$0xff] }
  0x9a   : > { %713 = vmatmul.mubr.f32.gmra.mrb[8].mxu1 %v247_v18  ;;  %572 = vmatprep.mubr.f32.mxu0 %v253_v19  ;;  %v323_v15 = vld [vmem:[%s2498_s7 + $0x350] sm:$0xff]  ;;  %v325_v16 = vld [vmem:[%s2498_s7 + $0x360] sm:$0xff]  ;;  %v322_v17 = vld [vmem:[%s2498_s7 + $0x348] sm:$0xff] }
  0x9b   : > { %717 = vmatprep.mubr.f32.mxu1 %v255_v21  ;;  %1972 = vmatpush3.bf16.msra.mxu0 %v1971_v20  ;;  %v324_v18 = vld [vmem:[%s2498_s7 + $0x358] sm:$0xff]  ;;  %v222_v19 = vld [vmem:[%s2498_s7 + $0x28] sm:$0xff]  ;;  %v221_v21 = vld [vmem:[%s2498_s7 + $0x20] sm:$0xff] }
  0x9c   : > { %2001 = vmatpush3.bf16.msra.mxu1 %v1971_v20  ;;  %1974 = vmatprep.subr.bf16.mxu0 %v1973_v22  ;;  %v306_v20 = vld [vmem:[%s2498_s7 + $0x2c8] sm:$0xff]  ;;  %v229_v23 = vld [vmem:[%s2498_s7 + $0x60] sm:$0xff]  ;;  %v228_v25 = vld [vmem:[%s2498_s7 + $0x58] sm:$0xff] }
  0x9d   : > { %573 = vmatmul.mubr.f32.gmra.mrb[10].mxu0 %v252_v27  ;;  %1994 = vmatprep.subr.bf16.mxu1 %v1973_v22  ;;  %v305_v22 = vld [vmem:[%s2498_s7 + $0x2c0] sm:$0xff]  ;;  %v312_v26 = vld [vmem:[%s2498_s7 + $0x2f8] sm:$0xff]  ;;  %v242_v33 = vld [vmem:[%s2498_s7 + $0xc8] sm:$0xff] }
  0x9e   : > { %718 = vmatmul.mubr.f32.gmra.mrb[10].mxu1 %v254_v28  ;;  %577 = vmatprep.mubr.f32.mxu0 %v260_v29  ;;  %v313_v24 = vld [vmem:[%s2498_s7 + $0x300] sm:$0xff]  ;;  %v236_v27 = vld [vmem:[%s2498_s7 + $0x98] sm:$0xff]  ;;  %v235_v29 = vld [vmem:[%s2498_s7 + $0x90] sm:$0xff] }
  0x9f   : > { %722 = vmatprep.mubr.f32.mxu1 %v262_v31  ;;  %1976 = vmatpush3.bf16.msra.mxu0 %v1975_v30  ;;  %v320_v28 = vld [vmem:[%s2498_s7 + $0x338] sm:$0xff]  ;;  %v243_v31 = vld [vmem:[%s2498_s7 + $0xd0] sm:$0xff]  ;;  %v326_v34 = vld [vmem:[%s2498_s7 + $0x368] sm:$0xff] }
  0xa0   : > { %2002 = vmatpush3.bf16.msra.mxu1 %v1975_v30  ;;  %1978 = vmatprep.subr.bf16.mxu0 %v1977_v32  ;;  %v319_v30 = vld [vmem:[%s2498_s7 + $0x330] sm:$0xff]  ;;  %v250_v35 = vld [vmem:[%s2498_s7 + $0x108] sm:$0xff]  ;;  %v264_v43 = vld [vmem:[%s2498_s7 + $0x178] sm:$0xff] }
  0xa1   : > { %578 = vmatmul.mubr.f32.gmra.mrb[12].mxu0 %v259_v37  ;;  %1995 = vmatprep.subr.bf16.mxu1 %v1977_v32  ;;  %v327_v32 = vld [vmem:[%s2498_s7 + $0x370] sm:$0xff]  ;;  %v249_v37 = vld [vmem:[%s2498_s7 + $0x100] sm:$0xff]  ;;  %v258_v46 = vld [vmem:[%s2498_s7 + $0x148] sm:$0xff] }
  0xa2   : > { %723 = vmatmul.mubr.f32.gmra.mrb[12].mxu1 %v261_v38  ;;  %582 = vmatprep.mubr.f32.mxu0 %v267_v39  ;;  %v223_v36 = vld [vmem:[%s2498_s7 + $0x30] sm:$0xff]  ;;  %v230_v38 = vld [vmem:[%s2498_s7 + $0x68] sm:$0xff]  ;;  %v257_v39 = vld [vmem:[%s2498_s7 + $0x140] sm:$0xff] }
  0xa3   : > { %727 = vmatprep.mubr.f32.mxu1 %v269_v41  ;;  %1980 = vmatpush3.bf16.msra.mxu0 %v1979_v40  ;;  %v256_v41 = vld [vmem:[%s2498_s7 + $0x138] sm:$0xff]  ;;  %v251_v44 = vld [vmem:[%s2498_s7 + $0x110] sm:$0xff] }
  0xa4   : > { %2003 = vmatpush3.bf16.msra.mxu1 %v1979_v40  ;;  %1982 = vmatprep.subr.bf16.mxu0 %v1981_v42  ;;  %v237_v40 = vld [vmem:[%s2498_s7 + $0xa0] sm:$0xff]  ;;  %v271_v47 = vld [vmem:[%s2498_s7 + $0x1b0] sm:$0xff] }
  0xa5   : > { %583 = vmatmul.mubr.f32.gmra.mrb[14].mxu0 %v266_v45  ;;  %1996 = vmatprep.subr.bf16.mxu1 %v1981_v42  ;;  %v244_v42 = vld [vmem:[%s2498_s7 + $0xd8] sm:$0xff]  ;;  %v263_v45 = vld [vmem:[%s2498_s7 + $0x170] sm:$0xff] }
  0xa6   : > { %728 = vmatmul.mubr.f32.gmra.mrb[14].mxu1 %v268_v48  ;;  %587 = vmatprep.mubr.f32.mxu0 %v274_v49  ;;  %v265_v48 = vld [vmem:[%s2498_s7 + $0x180] sm:$0xff]  ;;  %v270_v49 = vld [vmem:[%s2498_s7 + $0x1a8] sm:$0xff] }
  0xa7   : > { %732 = vmatprep.mubr.f32.mxu1 %v276_v51  ;;  %1984 = vmatpush3.bf16.msra.mxu0 %v1983_v50  ;;  %v278_v51 = vld [vmem:[%s2498_s7 + $0x1e8] sm:$0xff] }
  0xa8   : > { %2004 = vmatpush3.bf16.msra.mxu1 %v1983_v50  ;;  %v272_v50 = vld [vmem:[%s2498_s7 + $0x1b8] sm:$0xff] }
  0xa9   : > { %588 = vmatmul.mubr.f32.gmra.mrb[16].mxu0 %v273_v53  ;;  %1986 = vmatprep.subr.bf16.mxu1 %v2836_v52  ;;  %v277_v53 = vld [vmem:[%s2498_s7 + $0x1e0] sm:$0xff] }
  0xaa   : > { %733 = vmatmul.mubr.f32.gmra.mrb[16].mxu1 %v275_v54  ;;  %592 = vmatprep.mubr.f32.mxu0 %v281_v55  ;;  %v286_v54 = vld [vmem:[%s2498_s7 + $0x228] sm:$0xff]  ;;  %v285_v55 = vld [vmem:[%s2498_s7 + $0x220] sm:$0xff] }
  0xab   : > { %737 = vmatprep.mubr.f32.mxu1 %v283_v56  ;;  %v293_v56 = vld [vmem:[%s2498_s7 + $0x260] sm:$0xff] }
  0xad   : > { %593 = vmatmul.mubr.f32.gmra.mrb[18].mxu0 %v280_v57  ;;  %v284_v57 = vld [vmem:[%s2498_s7 + $0x218] sm:$0xff] }
  0xae   : > { %738 = vmatmul.mubr.f32.gmra.mrb[18].mxu1 %v282_v58  ;;  %597 = vmatprep.mubr.f32.mxu0 %v288_v59  ;;  %v300_v58 = vld [vmem:[%s2498_s7 + $0x298] sm:$0xff] }
  0xaf   : > { %742 = vmatprep.mubr.f32.mxu1 %v290_v60  ;;  %v292_v59 = vld [vmem:[%s2498_s7 + $0x258] sm:$0xff]  ;;  %v307_v60 = vld [vmem:[%s2498_s7 + $0x2d0] sm:$0xff] }
  0xb1   : > { %598 = vmatmul.mubr.f32.gmra.mrb[20].mxu0 %v287_v61  ;;  %v291_v61 = vld [vmem:[%s2498_s7 + $0x250] sm:$0xff] }
  0xb2   : > { %743 = vmatmul.mubr.f32.gmra.mrb[20].mxu1 %v289_v62  ;;  %602 = vmatprep.mubr.f32.mxu0 %v295_v63  ;;  %v314_v62 = vld [vmem:[%s2498_s7 + $0x308] sm:$0xff]  ;;  %v299_v63 = vld [vmem:[%s2498_s7 + $0x290] sm:$0xff] }
  0xb3   : > { %747 = vmatprep.mubr.f32.mxu1 %v297_v0  ;;  %v321_v0 = vld [vmem:[%s2498_s7 + $0x340] sm:$0xff] }
  0xb5   : > { %603 = vmatmul.mubr.f32.gmra.mrb[22].mxu0 %v294_v1  ;;  %v298_v1 = vld [vmem:[%s2498_s7 + $0x288] sm:$0xff] }
  0xb6   : > { %748 = vmatmul.mubr.f32.gmra.mrb[22].mxu1 %v296_v2  ;;  %607 = vmatprep.mubr.f32.mxu0 %v302_v3  ;;  %v328_v2 = vld [vmem:[%s2498_s7 + $0x378] sm:$0xff] }
  0xb7   : > { %752 = vmatprep.mubr.f32.mxu1 %v304_v4  ;;  %v2934_v4 = vld [vmem:[#allocation4] ss:$0 sm:$0xff] }
  0xb9   : > { %608 = vmatmul.mubr.f32.gmra.mrb[24].mxu0 %v301_v5 }
  0xba   : > { %753 = vmatmul.mubr.f32.gmra.mrb[24].mxu1 %v303_v6  ;;  %612 = vmatprep.mubr.f32.mxu0 %v309_v7 }
  0xbb   : > { %757 = vmatprep.mubr.f32.mxu1 %v311_v8 }
  0xbd   : > { %613 = vmatmul.mubr.f32.gmra.mrb[26].mxu0 %v308_v9 }
  0xbe   : > { %758 = vmatmul.mubr.f32.gmra.mrb[26].mxu1 %v310_v10  ;;  %617 = vmatprep.mubr.f32.mxu0 %v316_v11 }
  0xbf   : > { %762 = vmatprep.mubr.f32.mxu1 %v318_v12 }
  0xc1   : > { %618 = vmatmul.mubr.f32.gmra.mrb[28].mxu0 %v315_v13 }
  0xc2   : > { %763 = vmatmul.mubr.f32.gmra.mrb[28].mxu1 %v317_v14  ;;  %622 = vmatprep.mubr.f32.mxu0 %v323_v15 }
  0xc3   : > { %767 = vmatprep.mubr.f32.mxu1 %v325_v16 }
  0xc5   : > { %623 = vmatmul.mubr.f32.gmra.mrb[30].mxu0 %v322_v17 }
  0xc6   : > { %768 = vmatmul.mubr.f32.gmra.mrb[30].mxu1 %v324_v18  ;;  %837 = vmatprep.mubr.f32.mxu0 %v222_v19 }
  0xc7   : > { %897 = vmatprep.mubr.f32.mxu1 %v306_v20 }
  0xc9   : > { %838 = vmatmul.mubr.f32.vlgmr.msra.gmra.mrb[32].mxu0 %v221_v21 }
  0xca   : > { %898 = vmatmul.mubr.f32.vlgmr.msra.gmra.mrb[32].mxu1 %v305_v22  ;;  %842 = vmatprep.mubr.f32.mxu0 %v229_v23 }
  0xcb   : > { %1988 = vmatpush3.bf16.msra.mxu1 %v2836_v52  ;;  %902 = vmatprep.mubr.f32.mxu1 %v313_v24  ;;  %v279_v52 = vld [vmem:[%s2498_s7 + $0x1f0] sm:$0xff]  ;;  %s1565_s7 = sshll.u32 %s2494_s21, 7  ;;  %s1584_s21 = sshll.u32 (%p3315_p6), %s2385_s16, 4 }
  0xcc   : > { %s3146_s22 = scalar_lea.vmem [#allocation6], %s1565_s7   ;;  %s1264_s15 = ssub.s32 (%p3315_p6), 38, %s1584_s21 }
  0xcd   : > { %843 = vmatmul.mubr.f32.gmra.mrb[34].mxu0 %v228_v25  ;;  %p1265_p7 = scmp.lt.s32.totalorder (%p3315_p6), %s1264_s15, 16 }
  0xce   : > { %903 = vmatmul.mubr.f32.gmra.mrb[34].mxu1 %v312_v26  ;;  %847 = vmatprep.mubr.f32.mxu0 %v236_v27 }
  0xcf   : > { %907 = vmatprep.mubr.f32.mxu1 %v320_v28 }
  0xd1   : > { %848 = vmatmul.mubr.f32.gmra.mrb[36].mxu0 %v235_v29 }
  0xd2   : > { %908 = vmatmul.mubr.f32.gmra.mrb[36].mxu1 %v319_v30  ;;  %852 = vmatprep.mubr.f32.mxu0 %v243_v31 }
  0xd3   : > { %912 = vmatprep.mubr.f32.mxu1 %v327_v32 }
  0xd5   : > { %853 = vmatmul.mubr.f32.gmra.mrb[38].mxu0 %v242_v33 }
  0xd6   : > { %913 = vmatmul.mubr.f32.gmra.mrb[38].mxu1 %v326_v34  ;;  %857 = vmatprep.mubr.f32.mxu0 %v250_v35 }
  0xd7   : > { %1865 = vmatprep.mubr.msk.f32.mxu1 %vm434_vm0, %v223_v36 }
  0xd9   : > { %858 = vmatmul.mubr.f32.gmra.mrb[40].mxu0 %v249_v37 }
  0xda   : > { %1866 = vmatmul.mubr.msk.f32.vlgmr.msra.gmra.mrb[40].mxu1 %vm434_vm0, %v230_v38  ;;  %862 = vmatprep.mubr.f32.mxu0 %v257_v39 }
  0xdb   : > { %1868 = vmatprep.mubr.msk.f32.mxu1 %vm434_vm0, %v237_v40 }
  0xdd   : > { %863 = vmatmul.mubr.f32.gmra.mrb[42].mxu0 %v256_v41 }
  0xde   : > { %1869 = vmatmul.mubr.msk.f32.gmra.mrb[42].mxu1 %vm434_vm0, %v244_v42  ;;  %867 = vmatprep.mubr.f32.mxu0 %v264_v43 }
  0xdf   : > { %1871 = vmatprep.mubr.msk.f32.mxu1 %vm434_vm0, %v251_v44 }
  0xe1   : > { %868 = vmatmul.mubr.f32.gmra.mrb[44].mxu0 %v263_v45 }
  0xe2   : > { %1872 = vmatmul.mubr.msk.f32.gmra.mrb[44].mxu1 %vm434_vm0, %v258_v46  ;;  %872 = vmatprep.mubr.f32.mxu0 %v271_v47 }
  0xe3   : > { %1874 = vmatprep.mubr.msk.f32.mxu1 %vm434_vm0, %v265_v48 }
  0xe5   : > { %873 = vmatmul.mubr.f32.gmra.mrb[46].mxu0 %v270_v49 }
  0xe6   : > { %1875 = vmatmul.mubr.msk.f32.gmra.mrb[46].mxu1 %vm434_vm0, %v272_v50  ;;  %877 = vmatprep.mubr.f32.mxu0 %v278_v51 }
  0xe7   : > { %1877 = vmatprep.mubr.msk.f32.mxu1 %vm434_vm0, %v279_v52 }
  0xe9   : > { %878 = vmatmul.mubr.f32.gmra.mrb[48].mxu0 %v277_v53 }
  0xea   : > { %1878 = vmatmul.mubr.msk.f32.gmra.mrb[48].mxu1 %vm434_vm0, %v286_v54  ;;  %882 = vmatprep.mubr.f32.mxu0 %v285_v55 }
  0xeb   : > { %1880 = vmatprep.mubr.msk.f32.mxu1 %vm434_vm0, %v293_v56 }
  0xed   : > { %883 = vmatmul.mubr.f32.gmra.mrb[50].mxu0 %v284_v57 }
  0xee   : > { %1881 = vmatmul.mubr.msk.f32.gmra.mrb[50].mxu1 %vm434_vm0, %v300_v58  ;;  %887 = vmatprep.mubr.f32.mxu0 %v292_v59 }
  0xef   : > { %1883 = vmatprep.mubr.msk.f32.mxu1 %vm434_vm0, %v307_v60 }
  0xf1   : > { %888 = vmatmul.mubr.f32.gmra.mrb[52].mxu0 %v291_v61 }
  0xf2   : > { %1884 = vmatmul.mubr.msk.f32.gmra.mrb[52].mxu1 %vm434_vm0, %v314_v62  ;;  %892 = vmatprep.mubr.f32.mxu0 %v299_v63 }
  0xf3   : > { %1886 = vmatprep.mubr.msk.f32.mxu1 %vm434_vm0, %v321_v0 }
  0xf5   : > { %893 = vmatmul.mubr.f32.gmra.mrb[54].mxu0 %v298_v1 }
  0xf6   : > { %1887 = vmatmul.mubr.msk.f32.gmra.mrb[54].mxu1 %vm434_vm0, %v328_v2 }
 0x15c   : > { %v1635_v3 = vpop.f32.mrb[0].mxu0 }
 0x15d   : > { %v1636_v5 = vpop.f32.mrb[1].mxu0  ;;  %v1715_v6 = vpop.f32.mrb[0].mxu1 }
 0x15e   : > { %v1637_v7 = vadd.f32 %v1636_v5, %v1635_v3  ;;  %v1716_v8 = vpop.f32.mrb[1].mxu1 }
 0x15f   : > { %v1717_v9 = vadd.f32 %v1716_v8, %v1715_v6 }
 0x160   : > { %v550_v10 = vadd.f32 %v1637_v7, %v2934_v4  ;;  %v1638_v11 = vpop.f32.mrb[2].mxu0 }
 0x161   : > { %v1639_v12 = vpop.f32.mrb[3].mxu0  ;;  %v1718_v13 = vpop.f32.mrb[2].mxu1 }
 0x162   : > { %v2937_v14 = vadd.f32 %v1717_v9, %v550_v10  ;;  %v1640_v15 = vadd.f32 %v1639_v12, %v1638_v11  ;;  %v1719_v16 = vpop.f32.mrb[3].mxu1 }
 0x163   : > { %v1720_v17 = vadd.f32 %v1719_v16, %v1718_v13 }
 0x164   : > { %v555_v18 = vadd.f32 %v1640_v15, %v2934_v4  ;;  %v1641_v19 = vpop.f32.mrb[4].mxu0 }
 0x165   : > { %v1642_v20 = vpop.f32.mrb[5].mxu0  ;;  %v1721_v21 = vpop.f32.mrb[4].mxu1 }
 0x166   : > { %v2940_v22 = vadd.f32 %v1720_v17, %v555_v18  ;;  %v1643_v23 = vadd.f32 %v1642_v20, %v1641_v19  ;;  %v1722_v24 = vpop.f32.mrb[5].mxu1 }
 0x167   : > { %v1723_v25 = vadd.f32 %v1722_v24, %v1721_v21 }
 0x168   : > { %v560_v26 = vadd.f32 %v1643_v23, %v2934_v4  ;;  %v1644_v27 = vpop.f32.mrb[6].mxu0 }
 0x169   : > { %v1645_v28 = vpop.f32.mrb[7].mxu0  ;;  %v1724_v29 = vpop.f32.mrb[6].mxu1 }
 0x16a   : > { %v2943_v30 = vadd.f32 %v1723_v25, %v560_v26  ;;  %v1646_v31 = vadd.f32 %v1645_v28, %v1644_v27  ;;  %v1725_v32 = vpop.f32.mrb[7].mxu1 }
 0x16b   : > { %v1726_v33 = vadd.f32 %v1725_v32, %v1724_v29 }
 0x16c   : > { %v565_v34 = vadd.f32 %v1646_v31, %v2934_v4  ;;  %v1647_v35 = vpop.f32.mrb[8].mxu0 }
 0x16d   : > { %v1648_v36 = vpop.f32.mrb[9].mxu0  ;;  %v1727_v37 = vpop.f32.mrb[8].mxu1 }
 0x16e   : > { %v2946_v38 = vadd.f32 %v1726_v33, %v565_v34  ;;  %v1649_v39 = vadd.f32 %v1648_v36, %v1647_v35  ;;  %v1728_v40 = vpop.f32.mrb[9].mxu1 }
 0x16f   : > { %v1729_v41 = vadd.f32 %v1728_v40, %v1727_v37 }
 0x170   : > { %v570_v42 = vadd.f32 %v1649_v39, %v2934_v4  ;;  %v1650_v43 = vpop.f32.mrb[10].mxu0 }
 0x171   : > { %v1651_v44 = vpop.f32.mrb[11].mxu0  ;;  %v1730_v45 = vpop.f32.mrb[10].mxu1 }
 0x172   : > { %v2949_v46 = vadd.f32 %v1729_v41, %v570_v42  ;;  %v1652_v47 = vadd.f32 %v1651_v44, %v1650_v43  ;;  %v1731_v48 = vpop.f32.mrb[11].mxu1 }
 0x173   : > { %v1732_v49 = vadd.f32 %v1731_v48, %v1730_v45 }
 0x174   : > { %v575_v50 = vadd.f32 %v1652_v47, %v2934_v4  ;;  %v1653_v51 = vpop.f32.mrb[12].mxu0 }
 0x175   : > { %v1654_v52 = vpop.f32.mrb[13].mxu0  ;;  %v1733_v53 = vpop.f32.mrb[12].mxu1 }
 0x176   : > { %v2952_v54 = vadd.f32 %v1732_v49, %v575_v50  ;;  %v1655_v55 = vadd.f32 %v1654_v52, %v1653_v51  ;;  %v1734_v56 = vpop.f32.mrb[13].mxu1 }
 0x177   : > { %v1735_v57 = vadd.f32 %v1734_v56, %v1733_v53 }
 0x178   : > { %v580_v58 = vadd.f32 %v1655_v55, %v2934_v4  ;;  %v1656_v59 = vpop.f32.mrb[14].mxu0 }
 0x179   : > { %v1657_v60 = vpop.f32.mrb[15].mxu0  ;;  %v1736_v61 = vpop.f32.mrb[14].mxu1 }
 0x17a   : > { %v2955_v62 = vadd.f32 %v1735_v57, %v580_v58  ;;  %v1658_v63 = vadd.f32 %v1657_v60, %v1656_v59  ;;  %v1737_v0 = vpop.f32.mrb[15].mxu1 }
 0x17b   : > { %v1738_v1 = vadd.f32 %v1737_v0, %v1736_v61 }
 0x17c   : > { %v585_v2 = vadd.f32 %v1658_v63, %v2934_v4  ;;  %v1659_v3 = vpop.f32.mrb[16].mxu0 }
 0x17d   : > { %v1660_v5 = vpop.f32.mrb[17].mxu0  ;;  %v1739_v6 = vpop.f32.mrb[16].mxu1 }
 0x17e   : > { %v2958_v7 = vadd.f32 %v1738_v1, %v585_v2  ;;  %v1661_v8 = vadd.f32 %v1660_v5, %v1659_v3  ;;  %v1740_v9 = vpop.f32.mrb[17].mxu1 }
 0x17f   : > { %v1741_v10 = vadd.f32 %v1740_v9, %v1739_v6 }
 0x180   : > { %v590_v11 = vadd.f32 %v1661_v8, %v2934_v4  ;;  %v1662_v12 = vpop.f32.mrb[18].mxu0 }
 0x181   : > { %v1663_v13 = vpop.f32.mrb[19].mxu0  ;;  %v1742_v15 = vpop.f32.mrb[18].mxu1 }
 0x182   : > { %v2961_v16 = vadd.f32 %v1741_v10, %v590_v11  ;;  %v1664_v17 = vadd.f32 %v1663_v13, %v1662_v12  ;;  %v1743_v18 = vpop.f32.mrb[19].mxu1 }
 0x183   : > { %v1744_v19 = vadd.f32 %v1743_v18, %v1742_v15 }
 0x184   : > { %v595_v20 = vadd.f32 %v1664_v17, %v2934_v4  ;;  %v1665_v21 = vpop.f32.mrb[20].mxu0 }
 0x185   : > { %v1666_v23 = vpop.f32.mrb[21].mxu0  ;;  %v1745_v24 = vpop.f32.mrb[20].mxu1 }
 0x186   : > { %v2964_v25 = vadd.f32 %v1744_v19, %v595_v20  ;;  %v1667_v26 = vadd.f32 %v1666_v23, %v1665_v21  ;;  %v1746_v27 = vpop.f32.mrb[21].mxu1 }
 0x187   : > { %v1747_v28 = vadd.f32 %v1746_v27, %v1745_v24 }
 0x188   : > { %v600_v29 = vadd.f32 %v1667_v26, %v2934_v4  ;;  %v1668_v31 = vpop.f32.mrb[22].mxu0 }
 0x189   : > { %v1669_v32 = vpop.f32.mrb[23].mxu0  ;;  %v1748_v33 = vpop.f32.mrb[22].mxu1 }
 0x18a   : > { %v2967_v34 = vadd.f32 %v1747_v28, %v600_v29  ;;  %v1670_v35 = vadd.f32 %v1669_v32, %v1668_v31  ;;  %v1749_v36 = vpop.f32.mrb[23].mxu1 }
 0x18b   : > { %v1750_v37 = vadd.f32 %v1749_v36, %v1748_v33 }
 0x18c   : > { %v605_v39 = vadd.f32 %v1670_v35, %v2934_v4  ;;  %v1671_v40 = vpop.f32.mrb[24].mxu0 }
 0x18d   : > { %v1672_v41 = vpop.f32.mrb[25].mxu0  ;;  %v1751_v42 = vpop.f32.mrb[24].mxu1 }
 0x18e   : > { %v2970_v43 = vadd.f32 %v1750_v37, %v605_v39  ;;  %v1673_v44 = vadd.f32 %v1672_v41, %v1671_v40  ;;  %v1752_v45 = vpop.f32.mrb[25].mxu1 }
 0x18f   : > { %v1753_v47 = vadd.f32 %v1752_v45, %v1751_v42 }
 0x190   : > { %v610_v48 = vadd.f32 %v1673_v44, %v2934_v4  ;;  %v1674_v49 = vpop.f32.mrb[26].mxu0 }
 0x191   : > { %v1675_v50 = vpop.f32.mrb[27].mxu0  ;;  %v1754_v51 = vpop.f32.mrb[26].mxu1 }
 0x192   : > { %v755_v52 = vadd.f32 %v1753_v47, %v610_v48  ;;  %v1676_v53 = vadd.f32 %v1675_v50, %v1674_v49  ;;  %v1755_v55 = vpop.f32.mrb[27].mxu1 }
 0x193   : > { %v1756_v56 = vadd.f32 %v1755_v55, %v1754_v51 }
 0x194   : > { %v615_v57 = vadd.f32 %v1676_v53, %v2934_v4  ;;  %v1677_v58 = vpop.f32.mrb[28].mxu0 }
 0x195   : > { %v1678_v59 = vpop.f32.mrb[29].mxu0  ;;  %v1757_v60 = vpop.f32.mrb[28].mxu1 }
 0x196   : > { %v760_v61 = vadd.f32 %v1756_v56, %v615_v57  ;;  %v1679_v63 = vadd.f32 %v1678_v59, %v1677_v58  ;;  %v1758_v0 = vpop.f32.mrb[29].mxu1 }
 0x197   : > { %v1759_v1 = vadd.f32 %v1758_v0, %v1757_v60 }
 0x198   : > { %v620_v2 = vadd.f32 %v1679_v63, %v2934_v4  ;;  %v1680_v3 = vpop.f32.mrb[30].mxu0 }
 0x199   : > { %v1681_v5 = vpop.f32.mrb[31].mxu0  ;;  %v1760_v6 = vpop.f32.mrb[30].mxu1 }
 0x19a   : > { %v765_v8 = vadd.f32 %v1759_v1, %v620_v2  ;;  %v1682_v9 = vadd.f32 %v1681_v5, %v1680_v3  ;;  %v1761_v10 = vpop.f32.mrb[31].mxu1 }
 0x19b   : > { %v1762_v11 = vadd.f32 %v1761_v10, %v1760_v6 }
 0x19c   : > { %v625_v12 = vadd.f32 %v1682_v9, %v2934_v4  ;;  %v1795_v13 = vpop.f32.mrb[32].mxu0 }
 0x19d   : > { %v1831_v15 = vpop.f32.mrb[32].mxu1  ;;  %v1796_v17 = vpop.f32.mrb[33].mxu0 }
 0x19e   : > { %v770_v18 = vadd.f32 %v1762_v11, %v625_v12  ;;  %v1797_v19 = vadd.f32 %v1796_v17, %v1795_v13  ;;  %v1832_v20 = vpop.f32.mrb[33].mxu1 }
 0x19f   : > { %v1833_v21 = vadd.f32 %v1832_v20, %v1831_v15 }
 0x1a0   : > { %v1798_v23 = vpop.f32.mrb[34].mxu0  ;;  %v840_v24 = vadd.f32 %v1797_v19, %v2937_v14 }
 0x1a1   : > { %v1834_v26 = vpop.f32.mrb[34].mxu1  ;;  %v1799_v27 = vpop.f32.mrb[35].mxu0  ;;  %v2977_v28 = vadd.f32 %v1833_v21, %v755_v52 }
 0x1a2   : > { %v1800_v29 = vadd.f32 %v1799_v27, %v1798_v23  ;;  %v1835_v31 = vpop.f32.mrb[35].mxu1 }
 0x1a3   : > { %v1836_v32 = vadd.f32 %v1835_v31, %v1834_v26 }
 0x1a4   : > { %v1801_v33 = vpop.f32.mrb[36].mxu0  ;;  %v845_v4 = vadd.f32 %v1800_v29, %v2940_v22 }
 0x1a5   : > { %v1837_v35 = vpop.f32.mrb[36].mxu1  ;;  %v1802_v36 = vpop.f32.mrb[37].mxu0  ;;  %v2980_v37 = vadd.f32 %v1836_v32, %v760_v61 }
 0x1a6   : > { %v1803_v39 = vadd.f32 %v1802_v36, %v1801_v33  ;;  %v1838_v40 = vpop.f32.mrb[37].mxu1 }
 0x1a7   : > { %v1839_v41 = vadd.f32 %v1838_v40, %v1837_v35 }
 0x1a8   : > { %v1804_v42 = vpop.f32.mrb[38].mxu0  ;;  %v850_v14 = vadd.f32 %v1803_v39, %v2943_v30 }
 0x1a9   : > { %v1840_v44 = vpop.f32.mrb[38].mxu1  ;;  %v1805_v45 = vpop.f32.mrb[39].mxu0  ;;  %v2983_v47 = vadd.f32 %v1839_v41, %v765_v8 }
 0x1aa   : > { %v1806_v48 = vadd.f32 %v1805_v45, %v1804_v42  ;;  %v1841_v49 = vpop.f32.mrb[39].mxu1 }
 0x1ab   : > { %v1842_v50 = vadd.f32 %v1841_v49, %v1840_v44 }
 0x1ac   : > { %v1807_v51 = vpop.f32.mrb[40].mxu0  ;;  %v855_v22 = vadd.f32 %v1806_v48, %v2946_v38 }
 0x1ad   : > { %v1867_v52 = vpop.f32.mrb[40].mxu1  ;;  %v1808_v53 = vpop.f32.mrb[41].mxu0  ;;  %v2986_v55 = vadd.f32 %v1842_v50, %v770_v18 }
 0x1ae   : > { %v2988_v56 = vadd.f32 %v1867_v52, %v845_v4  ;;  %v1809_v57 = vadd.f32 %v1808_v53, %v1807_v51  ;;  %v984_v58 = vpop.f32.mrb[41].mxu1 }
 0x1af   : > { %v2990_v30 = vadd.f32 %v984_v58, %v840_v24 }
 0x1b0   : > { %v1810_v59 = vpop.f32.mrb[42].mxu0  ;;  %v1067_v60 = vsel %vm1063_vm1, %v2988_v56, -inf  ;;  %v860_v61 = vadd.f32 %v1809_v57, %v2949_v46 }
 0x1b1   : > { %v1870_v63 = vpop.f32.mrb[42].mxu1  ;;  %1068 = vmax.xlane.f32.xlu0 %v1067_v60  ;;  %v1811_v38 = vpop.f32.mrb[43].mxu0  ;;  %v1064_v9 = vsel %vm1063_vm1, %v2990_v30, -inf }
 0x1b2   : > { %v2995_v0 = vadd.f32 %v1870_v63, %v855_v22  ;;  %v1812_v1 = vadd.f32 %v1811_v38, %v1810_v59  ;;  %v994_v2 = vpop.f32.mrb[43].mxu1 }
 0x1b3   : > { %v2997_v3 = vadd.f32 %v994_v2, %v850_v14 }
 0x1b4   : > { %v1813_v5 = vpop.f32.mrb[44].mxu0  ;;  %v865_v6 = vadd.f32 %v1812_v1, %v2952_v54  ;;  %v1073_v8 = vsel %vm1063_vm1, %v2995_v0, -inf }
 0x1b5   : > { %v1873_v10 = vpop.f32.mrb[44].mxu1  ;;  %1074 = vmax.xlane.f32.xlu1 %v1073_v8  ;;  %1065 = vmax.xlane.f32.xlu0 %v1064_v9  ;;  %v1814_v46 = vpop.f32.mrb[45].mxu0  ;;  %v1070_v54 = vsel %vm1063_vm1, %v2997_v3, -inf }
 0x1b6   : > { %v3004_v11 = vadd.f32 %v1873_v10, %v865_v6  ;;  %v1815_v12 = vadd.f32 %v1814_v46, %v1813_v5  ;;  %v1004_v13 = vpop.f32.mrb[45].mxu1 }
 0x1b7   : > { %v3006_v15 = vadd.f32 %v1004_v13, %v860_v61 }
 0x1b8   : > { %v1816_v17 = vpop.f32.mrb[46].mxu0  ;;  %v870_v18 = vadd.f32 %v1815_v12, %v2955_v62  ;;  %v1079_v31 = vsel %vm1063_vm1, %v3004_v11, -inf }
 0x1b9   : > { %v1876_v19 = vpop.f32.mrb[46].mxu1  ;;  %1071 = vmax.xlane.f32.xlu1 %v1070_v54  ;;  %v1817_v20 = vpop.f32.mrb[47].mxu0  ;;  %v1076_v21 = vsel %vm1063_vm1, %v3006_v15, -inf }
 0x1ba   : > { %v1818_v23 = vadd.f32 %v1817_v20, %v1816_v17  ;;  %v1014_v24 = vpop.f32.mrb[47].mxu1  ;;  %1077 = vmax.xlane.f32.xlu0 %v1076_v21 }
 0x1bb   : > { %v3013_v26 = vadd.f32 %v1014_v24, %v870_v18 }
 0x1bc   : > { %v875_v27 = vadd.f32 %v1818_v23, %v2958_v7  ;;  %v1819_v29 = vpop.f32.mrb[48].mxu0 }
 0x1bd   : > { %1080 = vmax.xlane.f32.xlu1 %v1079_v31  ;;  %v1820_v32 = vpop.f32.mrb[49].mxu0  ;;  %v1879_v62 = vpop.f32.mrb[48].mxu1  ;;  %v1082_v33 = vsel %vm1063_vm1, %v3013_v26, -inf }
 0x1be   : > { %v1821_v4 = vadd.f32 %v1820_v32, %v1819_v29  ;;  %1083 = vmax.xlane.f32.xlu0 %v1082_v33  ;;  %v1024_v35 = vpop.f32.mrb[49].mxu1  ;;  %v3020_v36 = vadd.f32 %v1876_v19, %v875_v27 }
 0x1c0   : > { %v880_v39 = vadd.f32 %v1821_v4, %v2961_v16  ;;  %v1822_v40 = vpop.f32.mrb[50].mxu0  ;;  %v1085_v7 = vsel %vm1063_vm1, %v3020_v36, -inf }
 0x1c1   : > { %v1823_v41 = vpop.f32.mrb[51].mxu0  ;;  %v1882_v42 = vpop.f32.mrb[50].mxu1  ;;  %1086 = vmax.xlane.f32.xlu1 %v1085_v7 }
 0x1c2   : > { %v3025_v14 = vadd.f32 %v1024_v35, %v880_v39  ;;  %v1824_v44 = vadd.f32 %v1823_v41, %v1822_v40  ;;  %v1034_v45 = vpop.f32.mrb[51].mxu1 }
 0x1c4   : > { %v885_v48 = vadd.f32 %v1824_v44, %v2964_v25  ;;  %v1825_v49 = vpop.f32.mrb[52].mxu0  ;;  %v1088_v50 = vsel %vm1063_vm1, %v3025_v14, -inf }
 0x1c5   : > { %v1885_v51 = vpop.f32.mrb[52].mxu1  ;;  %v1826_v22 = vpop.f32.mrb[53].mxu0  ;;  %1089 = vmax.xlane.f32.xlu0 %v1088_v50 }
 0x1c6   : > { %v3031_v16 = vadd.f32 %v1885_v51, %v2980_v37  ;;  %v1827_v52 = vadd.f32 %v1826_v22, %v1825_v49  ;;  %v1044_v53 = vpop.f32.mrb[53].mxu1  ;;  %v3033_v57 = vadd.f32 %v1879_v62, %v885_v48 }
 0x1c7   : > { %v3036_v58 = vadd.f32 %v1044_v53, %v2977_v28 }
 0x1c8   : > { %v890_v59 = vadd.f32 %v1827_v52, %v2967_v34  ;;  %v1828_v25 = vpop.f32.mrb[54].mxu0  ;;  %v1103_v60 = vsel %vm1063_vm1, %v3031_v16, -inf  ;;  %v1091_v6 = vsel %vm1063_vm1, %v3033_v57, -inf }
 0x1c9   : > { %v1888_v61 = vpop.f32.mrb[54].mxu1  ;;  %1104 = vmax.xlane.f32.xlu1 %v1103_v60  ;;  %v1829_v63 = vpop.f32.mrb[55].mxu0  ;;  %v1100_v37 = vsel %vm1063_vm1, %v3036_v58, -inf }
 0x1ca   : > { %v3044_v38 = vadd.f32 %v1888_v61, %v2986_v55  ;;  %v1830_v1 = vadd.f32 %v1829_v63, %v1828_v25  ;;  %v1054_v2 = vpop.f32.mrb[55].mxu1  ;;  %1101 = vmax.xlane.f32.xlu0 %v1100_v37  ;;  %v3046_v28 = vadd.f32 %v1034_v45, %v890_v59 }
 0x1cb   : > { %v3049_v34 = vadd.f32 %v1054_v2, %v2983_v47 }
 0x1cc   : > { %v895_v5 = vadd.f32 %v1830_v1, %v2970_v43  ;;  %v1094_v8 = vsel %vm1063_vm1, %v3046_v28, -inf  ;;  %v1109_v43 = vsel %vm1063_vm1, %v3044_v38, -inf }
 0x1cd   : > { %1092 = vmax.xlane.f32.xlu1 %v1091_v6  ;;  %v1106_v47 = vsel %vm1063_vm1, %v3049_v34, -inf }
 0x1ce   : > { %1095 = vmax.xlane.f32.xlu0 %v1094_v8  ;;  %v3056_v55 = vadd.f32 %v1882_v42, %v895_v5 }
 0x1d0   : > { %v1097_v9 = vsel %vm1063_vm1, %v3056_v55, -inf }
 0x1d1   : > { %1098 = vmax.xlane.f32.xlu1 %v1097_v9 }
 0x1d2   : > { %1107 = vmax.xlane.f32.xlu0 %v1106_v47 }
 0x1d5   : > { %1110 = vmax.xlane.f32.xlu1 %v1109_v43 }
 0x23e   : > { %v1069_v10 = vpop.xlane.xlu0 %1068 }
 0x23f   : > { %v1113_v46 = vsub.f32 %v2988_v56, %v1069_v10 }
 0x241   : > { %v1130_v12 = vmul.f32 1.442695, %v1113_v46 }
 0x242   : > { %v1075_v13 = vpop.xlane.xlu1 %1074  ;;  %v1066_v17 = vpop.xlane.xlu0 %1065 }
 0x243   : > { %2118 = vpow2.f32 %v1130_v12  ;;  %v1115_v54 = vsub.f32 %v2995_v0, %v1075_v13  ;;  %v1112_v18 = vsub.f32 %v2990_v30, %v1066_v17 }
 0x245   : > { %v1134_v19 = vmul.f32 1.442695, %v1115_v54  ;;  %v1128_v20 = vmul.f32 1.442695, %v1112_v18 }
 0x246   : > { %v1072_v21 = vpop.xlane.xlu1 %1071 }
 0x247   : > { %2120 = vpow2.f32 %v1134_v19  ;;  %v1114_v23 = vsub.f32 %v2997_v3, %v1072_v21  ;;  %v1078_v24 = vpop.xlane.xlu0 %1077 }
 0x248   : > { %2122 = vpow2.f32 %v1128_v20  ;;  %v1116_v27 = vsub.f32 %v3006_v15, %v1078_v24 }
 0x249   : > { %v1132_v29 = vmul.f32 1.442695, %v1114_v23 }
 0x24a   : > { %v1136_v56 = vmul.f32 1.442695, %v1116_v27  ;;  %v1081_v31 = vpop.xlane.xlu1 %1080 }
 0x24b   : > { %2124 = vpow2.f32 %v1132_v29  ;;  %v1117_v32 = vsub.f32 %v3004_v11, %v1081_v31  ;;  %v1084_v62 = vpop.xlane.xlu0 %1083 }
 0x24c   : > { %v1118_v0 = vsub.f32 %v3013_v26, %v1084_v62  ;;  %2126 = vpow2.f32 %v1136_v56 }
 0x24d   : > { %v3071_v30 = vpop.eup %2118  ;;  %v1138_v33 = vmul.f32 1.442695, %v1117_v32 }
 0x24e   : > { %v1140_v4 = vmul.f32 1.442695, %v1118_v0  ;;  %v1087_v35 = vpop.xlane.xlu1 %1086  ;;  %v1163_v3 = vsel %vm1063_vm1, %v3071_v30, 0.0 }
 0x24f   : > { %2128 = vpow2.f32 %v1138_v33  ;;  %v1119_v15 = vsub.f32 %v3020_v36, %v1087_v35  ;;  %1164 = vadd.xlane.f32.xlu1 %v1163_v3 }
 0x250   : > { %2130 = vpow2.f32 %v1140_v4 }
 0x251   : > { %v3076_v39 = vpop.eup %2120  ;;  %v1142_v40 = vmul.f32 1.442695, %v1119_v15 }
 0x252   : > { %v3078_v11 = vpop.eup %2122  ;;  %v1169_v26 = vsel %vm1063_vm1, %v3076_v39, 0.0  ;;  %v1090_v7 = vpop.xlane.xlu0 %1089 }
 0x253   : > { %2132 = vpow2.f32 %v1142_v40  ;;  %1170 = vadd.xlane.f32.xlu1 %v1169_v26  ;;  %v1160_v41 = vsel %vm1063_vm1, %v3078_v11, 0.0  ;;  %v1120_v42 = vsub.f32 %v3025_v14, %v1090_v7 }
 0x254   : > { %1161 = vadd.xlane.f32.xlu0 %v1160_v41 }
 0x255   : > { %v3085_v36 = vpop.eup %2124  ;;  %v1144_v44 = vmul.f32 1.442695, %v1120_v42 }
 0x256   : > { %v1105_v45 = vpop.xlane.xlu1 %1104  ;;  %v1166_v48 = vsel %vm1063_vm1, %v3085_v36, 0.0  ;;  %v3090_v51 = vpop.eup %2126 }
 0x257   : > { %2134 = vpow2.f32 %v1144_v44  ;;  %v1125_v49 = vsub.f32 %v3031_v16, %v1105_v45  ;;  %v1102_v50 = vpop.xlane.xlu0 %1101  ;;  %v1172_v16 = vsel %vm1063_vm1, %v3090_v51, 0.0 }
 0x258   : > { %1167 = vadd.xlane.f32.xlu0 %v1166_v48  ;;  %v1124_v22 = vsub.f32 %v3036_v58, %v1102_v50 }
 0x259   : > { %v3093_v52 = vpop.eup %2128  ;;  %v1154_v14 = vmul.f32 1.442695, %v1125_v49 }
 0x25a   : > { %v1152_v53 = vmul.f32 1.442695, %v1124_v22  ;;  %v1093_v59 = vpop.xlane.xlu1 %1092  ;;  %v1175_v25 = vsel %vm1063_vm1, %v3093_v52, 0.0  ;;  %v3100_v63 = vpop.eup %2130 }
 0x25b   : > { %2136 = vpow2.f32 %v1154_v14  ;;  %v1121_v60 = vsub.f32 %v3033_v57, %v1093_v59  ;;  %1176 = vadd.xlane.f32.xlu1 %v1175_v25  ;;  %v1096_v61 = vpop.xlane.xlu0 %1095  ;;  %v1178_v8 = vsel %vm1063_vm1, %v3100_v63, 0.0 }
 0x25c   : > { %2138 = vpow2.f32 %v1152_v53  ;;  %1173 = vadd.xlane.f32.xlu0 %v1172_v16  ;;  %v1122_v58 = vsub.f32 %v3046_v28, %v1096_v61 }
 0x25d   : > { %v3103_v37 = vpop.eup %2132  ;;  %v1146_v1 = vmul.f32 1.442695, %v1121_v60 }
 0x25e   : > { %v1148_v2 = vmul.f32 1.442695, %v1122_v58  ;;  %v1099_v5 = vpop.xlane.xlu1 %1098  ;;  %v1181_v6 = vsel %vm1063_vm1, %v3103_v37, 0.0 }
 0x25f   : > { %2140 = vpow2.f32 %v1146_v1  ;;  %v1123_v57 = vsub.f32 %v3056_v55, %v1099_v5  ;;  %v1108_v9 = vpop.xlane.xlu0 %1107  ;;  %1182 = vadd.xlane.f32.xlu1 %v1181_v6 }
 0x260   : > { %2142 = vpow2.f32 %v1148_v2  ;;  %1179 = vadd.xlane.f32.xlu0 %v1178_v8  ;;  %v1126_v28 = vsub.f32 %v3049_v34, %v1108_v9 }
 0x261   : > { %v3111_v47 = vpop.eup %2134  ;;  %v1150_v43 = vmul.f32 1.442695, %v1123_v57 }
 0x262   : > { %v1156_v10 = vmul.f32 1.442695, %v1126_v28  ;;  %v1111_v46 = vpop.xlane.xlu1 %1110  ;;  %v1184_v12 = vsel %vm1063_vm1, %v3111_v47, 0.0 }
 0x263   : > { %2144 = vpow2.f32 %v1150_v43  ;;  %v1127_v55 = vsub.f32 %v3044_v38, %v1111_v46 }
 0x264   : > { %2146 = vpow2.f32 %v1156_v10  ;;  %1185 = vadd.xlane.f32.xlu0 %v1184_v12 }
 0x265   : > { %v3116_v13 = vpop.eup %2136  ;;  %v1158_v17 = vmul.f32 1.442695, %v1127_v55 }
 0x266   : > { %v3118_v54 = vpop.eup %2138  ;;  %v1199_v34 = vsel %vm1063_vm1, %v3116_v13, 0.0 }
 0x267   : > { %2148 = vpow2.f32 %v1158_v17  ;;  %1200 = vadd.xlane.f32.xlu1 %v1199_v34  ;;  %v1196_v18 = vsel %vm1063_vm1, %v3118_v54, 0.0 }
 0x268   : > { %1197 = vadd.xlane.f32.xlu0 %v1196_v18 }
 0x269   : > { %v3124_v19 = vpop.eup %2140 }
 0x26a   : > { %v3126_v20 = vpop.eup %2142  ;;  %v1187_v38 = vsel %vm1063_vm1, %v3124_v19, 0.0 }
 0x26b   : > { %1188 = vadd.xlane.f32.xlu1 %v1187_v38  ;;  %v1190_v21 = vsel %vm1063_vm1, %v3126_v20, 0.0 }
 0x26c   : > { %1191 = vadd.xlane.f32.xlu0 %v1190_v21 }
 0x26d   : > { %v3132_v23 = vpop.eup %2144 }
 0x26e   : > { %v3134_v24 = vpop.eup %2146  ;;  %v1193_v27 = vsel %vm1063_vm1, %v3132_v23, 0.0 }
 0x26f   : > { %1194 = vadd.xlane.f32.xlu1 %v1193_v27  ;;  %v1202_v29 = vsel %vm1063_vm1, %v3134_v24, 0.0 }
 0x270   : > { %1203 = vadd.xlane.f32.xlu0 %v1202_v29 }
 0x271   : > { %v3140_v56 = vpop.eup %2148 }
 0x272   : > { %v1205_v31 = vsel %vm1063_vm1, %v3140_v56, 0.0 }
 0x273   : > { %1206 = vadd.xlane.f32.xlu1 %v1205_v31 }
 0x2dc   : > { %v1165_v32 = vpop.xlane.xlu1 %1164 }
 0x2dd   : > { %2150 = vrcp.f32 %v1165_v32 }
 0x2e0   : > { %v1171_v62 = vpop.xlane.xlu1 %1170 }
 0x2e1   : > { %2152 = vrcp.f32 %v1171_v62  ;;  %v1162_v0 = vpop.xlane.xlu0 %1161 }
 0x2e2   : > { %2154 = vrcp.f32 %v1162_v0 }
 0x2e5   : > { %v1168_v33 = vpop.xlane.xlu0 %1167 }
 0x2e6   : > { %2156 = vrcp.f32 %v1168_v33 }
 0x2e7   : > { %v2151_v4 = vpop.eup %2150 }
 0x2e8   : > { %v1225_v35 = vmul.f32 %v2151_v4, %v3071_v30  ;;  %v1177_v3 = vpop.xlane.xlu1 %1176 }
 0x2e9   : > { %2158 = vrcp.f32 %v1177_v3  ;;  %v1174_v15 = vpop.xlane.xlu0 %1173 }
 0x2ea   : > { %1241 = vst.msk [vmem:[%s3146_s22 + $0x8] sm:$0xff] %vm1063_vm1, %v1225_v35  ;;  %2160 = vrcp.f32 %v1174_v15 }
 0x2eb   : > { %v2153_v40 = vpop.eup %2152 }
 0x2ec   : > { %v2155_v26 = vpop.eup %2154  ;;  %v1227_v7 = vmul.f32 %v2153_v40, %v3076_v39  ;;  %v1183_v41 = vpop.xlane.xlu1 %1182 }
 0x2ed   : > { %v1224_v42 = vmul.f32 %v2155_v26, %v3078_v11  ;;  %v1180_v30 = vpop.xlane.xlu0 %1179  ;;  %2162 = vrcp.f32 %v1183_v41 }
 0x2ee   : > { %1243 = vst.msk [vmem:[%s3146_s22 + $0x18] sm:$0xff] %vm1063_vm1, %v1227_v7  ;;  %2164 = vrcp.f32 %v1180_v30 }
 0x2ef   : > { %1240 = vst.msk [vmem:[%s3146_s22] sm:$0xff] %vm1063_vm1, %v1224_v42 }
 0x2f0   : > { %v2157_v44 = vpop.eup %2156 }
 0x2f1   : > { %v1226_v45 = vmul.f32 %v2157_v44, %v3085_v36  ;;  %v1186_v48 = vpop.xlane.xlu0 %1185 }
 0x2f2   : > { %2166 = vrcp.f32 %v1186_v48 }
 0x2f3   : > { %v2159_v49 = vpop.eup %2158  ;;  %1242 = vst.msk [vmem:[%s3146_s22 + $0x10] sm:$0xff] %vm1063_vm1, %v1226_v45 }
 0x2f4   : > { %v2161_v39 = vpop.eup %2160  ;;  %v1229_v11 = vmul.f32 %v2159_v49, %v3093_v52  ;;  %v1201_v50 = vpop.xlane.xlu1 %1200 }
 0x2f5   : > { %v1228_v22 = vmul.f32 %v2161_v39, %v3090_v51  ;;  %2168 = vrcp.f32 %v1201_v50  ;;  %v1198_v14 = vpop.xlane.xlu0 %1197 }
 0x2f6   : > { %1245 = vst.msk [vmem:[%s3146_s22 + $0x28] sm:$0xff] %vm1063_vm1, %v1229_v11  ;;  %2170 = vrcp.f32 %v1198_v14 }
 0x2f7   : > { %v2163_v53 = vpop.eup %2162  ;;  %1244 = vst.msk [vmem:[%s3146_s22 + $0x20] sm:$0xff] %vm1063_vm1, %v1228_v22 }
 0x2f8   : > { %v2165_v36 = vpop.eup %2164  ;;  %v1231_v59 = vmul.f32 %v2163_v53, %v3103_v37  ;;  %v1189_v25 = vpop.xlane.xlu1 %1188 }
 0x2f9   : > { %v1230_v60 = vmul.f32 %v2165_v36, %v3100_v63  ;;  %2172 = vrcp.f32 %v1189_v25  ;;  %v1192_v52 = vpop.xlane.xlu0 %1191 }
 0x2fa   : > { %1247 = vst.msk [vmem:[%s3146_s22 + $0x38] sm:$0xff] %vm1063_vm1, %v1231_v59  ;;  %2174 = vrcp.f32 %v1192_v52 }
 0x2fb   : > { %1246 = vst.msk [vmem:[%s3146_s22 + $0x30] sm:$0xff] %vm1063_vm1, %v1230_v60 }
 0x2fc   : > { %v2167_v51 = vpop.eup %2166  ;;  %v1195_v16 = vpop.xlane.xlu1 %1194 }
 0x2fd   : > { %v1232_v61 = vmul.f32 %v2167_v51, %v3111_v47  ;;  %2176 = vrcp.f32 %v1195_v16  ;;  %v1204_v58 = vpop.xlane.xlu0 %1203 }
 0x2fe   : > { %2178 = vrcp.f32 %v1204_v58 }
 0x2ff   : > { %v2169_v37 = vpop.eup %2168  ;;  %1248 = vst.msk [vmem:[%s3146_s22 + $0x40] sm:$0xff] %vm1063_vm1, %v1232_v61 }
 0x300   : > { %v2171_v63 = vpop.eup %2170  ;;  %v1237_v1 = vmul.f32 %v2169_v37, %v3116_v13  ;;  %v1207_v2 = vpop.xlane.xlu1 %1206 }
 0x301   : > { %v1236_v5 = vmul.f32 %v2171_v63, %v3118_v54  ;;  %2180 = vrcp.f32 %v1207_v2 }
 0x302   : > { %1253 = vst.msk [vmem:[%s3146_s22 + $0x68] sm:$0xff] %vm1063_vm1, %v1237_v1 }
 0x303   : > { %v2173_v6 = vpop.eup %2172  ;;  %1252 = vst.msk [vmem:[%s3146_s22 + $0x60] sm:$0xff] %vm1063_vm1, %v1236_v5 }
 0x304   : > { %v2175_v57 = vpop.eup %2174  ;;  %v1233_v8 = vmul.f32 %v2173_v6, %v3124_v19 }
 0x305   : > { %v1234_v9 = vmul.f32 %v2175_v57, %v3126_v20 }
 0x306   : > { %1249 = vst.msk [vmem:[%s3146_s22 + $0x48] sm:$0xff] %vm1063_vm1, %v1233_v8 }
 0x307   : > { %v2177_v28 = vpop.eup %2176  ;;  %1250 = vst.msk [vmem:[%s3146_s22 + $0x50] sm:$0xff] %vm1063_vm1, %v1234_v9 }
 0x308   : > { %v2179_v47 = vpop.eup %2178  ;;  %v1235_v43 = vmul.f32 %v2177_v28, %v3132_v23  ;;  %1262 = sbr.rel (!%p3315_p6) target bundleno = 832 (0x340), region = 44 }
 0x309   : > { %v1238_v10 = vmul.f32 %v2179_v47, %v3134_v24 }
 0x30a   : > { %1251 = vst.msk [vmem:[%s3146_s22 + $0x58] sm:$0xff] %vm1063_vm1, %v1235_v43 }
 0x30b   : > { %v2181_v46 = vpop.eup %2180  ;;  %1254 = vst.msk [vmem:[%s3146_s22 + $0x70] sm:$0xff] %vm1063_vm1, %v1238_v10 }
 0x30c   : > { %v1239_v12 = vmul.f32 %v2181_v46, %v3140_v56 }
 0x30e   : > { %1255 = vst.msk [vmem:[%s3146_s22 + $0x78] sm:$0xff] %vm1063_vm1, %v1239_v12 }
 0x30f   : > { %s3326_s15 = smov (!%p1265_p7, %s1264_s15), 16 }
 0x310   : > { %s1585_s18 = sshll.u32 %s3326_s15, 7 }
 0x311   : > { %p1588_p9 = scmp.eq.s32.totalorder %s1585_s18, 0 }
 0x312   : > { %s3208_s23 = sshrl.u32 (!%p1588_p9), %s3326_s15, 4 }
 0x313   : > { %1273 = sbr.rel (%p1588_p9) target bundleno = 832 (0x340), region = 48  ;;  %p1589_p12 = scmp.le.s32.totalorder (!%p1588_p9), %s3208_s23, 0 }
 0x31a   : > { %1496 = sbr.rel (%p1589_p12) target bundleno = 811 (0x32b), region = 130  ;;  %s3316_s16 = smov (!%p1589_p12), %s3202_s12 }
 0x31b   : > { %s3317_s19 = smov (!%p1589_p12), %s3146_s22  ;;  %s3217_s25 = smov (!%p1589_p12), 0  }
 0x31c   : > { %s3219_s27 = smov (!%p1589_p12), 0  }
 0x321 LB: >> { %v1365_v55 = vld [vmem:[%s2316_s19] sm:$0xff]  ;;  %v1367_v13 = vld [vmem:[%s2316_s19 + $0x8] sm:$0xff]  ;;  %v1369_v17 = vld [vmem:[%s2316_s19 + $0x10] sm:$0xff]  ;;  %s1397_s26 = sadd.s32 1, %s2320_s25  ;;  %s1359_s27 = sadd.s32 1, %s2324_s27   ;;  %s2324_s27 = sphi %s3219_s27, %s1359_s27   ;;  %s2320_s25 = sphi %s3217_s25, %s3318_s25   ;;  %s2316_s19 = sphi %s3317_s19, %s1402_s19   ;;  %s2312_s16 = sphi %s3316_s16, %s1403_s16  }
 0x322   : >> { %1366 = vst [vmem:[%s2312_s16] sm:$0xff] %v1365_v55  ;;  %1368 = vst [vmem:[%s2312_s16 + $0x8] sm:$0xff] %v1367_v13  ;;  %v1371_v54 = vld [vmem:[%s2316_s19 + $0x18] sm:$0xff]  ;;  %v1373_v34 = vld [vmem:[%s2316_s19 + $0x20] sm:$0xff]  ;;  %p1398_p0 = scmp.ge.s32.totalorder %s1397_s26, %s3208_s23  ;;  %p1358_p2 = scmp.ge.s32.totalorder %s1359_s27, %s3208_s23 }
 0x323   : >> { %1370 = vst [vmem:[%s2312_s16 + $0x10] sm:$0xff] %v1369_v17  ;;  %v1375_v18 = vld [vmem:[%s2316_s19 + $0x28] sm:$0xff]  ;;  %1372 = vst [vmem:[%s2312_s16 + $0x18] sm:$0xff] %v1371_v54  ;;  %v1377_v19 = vld [vmem:[%s2316_s19 + $0x30] sm:$0xff] }
 0x324   : >> { %1374 = vst [vmem:[%s2312_s16 + $0x20] sm:$0xff] %v1373_v34  ;;  %1376 = vst [vmem:[%s2312_s16 + $0x28] sm:$0xff] %v1375_v18  ;;  %v1379_v20 = vld [vmem:[%s2316_s19 + $0x38] sm:$0xff]  ;;  %v1381_v38 = vld [vmem:[%s2316_s19 + $0x40] sm:$0xff]  ;;  %s3328_s26 = smov (%p1398_p0, %s1397_s26), 0  ;;  %1361 = sbr.rel (!%p1358_p2) target bundleno = 801 (0x321), region = 136 }
 0x325   : >> { %1378 = vst [vmem:[%s2312_s16 + $0x30] sm:$0xff] %v1377_v19  ;;  %1380 = vst [vmem:[%s2312_s16 + $0x38] sm:$0xff] %v1379_v20  ;;  %v1383_v21 = vld [vmem:[%s2316_s19 + $0x48] sm:$0xff]  ;;  %v1385_v23 = vld [vmem:[%s2316_s19 + $0x50] sm:$0xff]  ;;  %s1590_s4 = sshll.u32 %s3328_s26, 7  ;;  %s3318_s25 = smov %s3328_s26 }
 0x326   : >> { %1382 = vst [vmem:[%s2312_s16 + $0x40] sm:$0xff] %v1381_v38  ;;  %v1387_v24 = vld [vmem:[%s2316_s19 + $0x58] sm:$0xff]  ;;  %1384 = vst [vmem:[%s2312_s16 + $0x48] sm:$0xff] %v1383_v21  ;;  %v1389_v27 = vld [vmem:[%s2316_s19 + $0x60] sm:$0xff] }
 0x327   : >> { %1386 = vst [vmem:[%s2312_s16 + $0x50] sm:$0xff] %v1385_v23  ;;  %1388 = vst [vmem:[%s2312_s16 + $0x58] sm:$0xff] %v1387_v24  ;;  %v1391_v29 = vld [vmem:[%s2316_s19 + $0x68] sm:$0xff]  ;;  %v1393_v56 = vld [vmem:[%s2316_s19 + $0x70] sm:$0xff] }
 0x328   : >> { %1390 = vst [vmem:[%s2312_s16 + $0x60] sm:$0xff] %v1389_v27  ;;  %1392 = vst [vmem:[%s2312_s16 + $0x68] sm:$0xff] %v1391_v29  ;;  %v1395_v31 = vld [vmem:[%s2316_s19 + $0x78] sm:$0xff]  ;;  %s1402_s19 = scalar_lea.vmem %s3146_s22, %s1590_s4 [#allocation6]  }
 0x329   : >> { %1394 = vst [vmem:[%s2312_s16 + $0x70] sm:$0xff] %v1393_v56  ;;  %1396 = vst [vmem:[%s2312_s16 + $0x78] sm:$0xff] %v1395_v31  ;;  %s1403_s16 = scalar_lea.vmem %s3202_s12, %s1590_s4  }
 0x32b PF: > { %s3277_s5 = sand.u32 15, %s3326_s15   ;;  %s1601_s24 = sshll.u32 %s3208_s23, 7 }
 0x32c   : > { %s1408_s28 = scalar_lea.vmem %s3146_s22, %s1601_s24 [#allocation6]   ;;  %s1410_s29 = scalar_lea.vmem %s3202_s12, %s1601_s24  }
 0x32d   : > { %p1595_p5 = scmp.le.s32.totalorder %s3277_s5, 0 }
 0x32e   : > { %s2326_s30 = smov (!%p1595_p5), %s1410_s29   ;;  %s2330_s6 = smov (!%p1595_p5), %s1408_s28  }
 0x32f   : > { %1510 = sbr.rel (%p1595_p5) target bundleno = 832 (0x340), region = 141  ;;  %s2334_s8 = smov (!%p1595_p5), 0  }
 0x330   : > { %s2338_s7 = smov (!%p1595_p5), 0  }
 0x336 LB: >> { %v1420_v32 = vld [vmem:[%s2332_s6] sm:$0xff]  ;;  %s1422_s21 = sadd.s32 1, %s2336_s8  ;;  %s1414_s7 = sadd.s32 1, %s2340_s7   ;;  %s2340_s7 = sphi %s2338_s7, %s1414_s7   ;;  %s2336_s8 = sphi %s2334_s8, %s2335_s8   ;;  %s2332_s6 = sphi %s2330_s6, %s1427_s6   ;;  %s2328_s30 = sphi %s2326_s30, %s1428_s30  }
 0x337   : >> { %1421 = vst [vmem:[%s2328_s30] sm:$0xff] %v1420_v32  ;;  %p1423_p8 = scmp.ge.s32.totalorder %s1422_s21, %s3277_s5  ;;  %p1413_p10 = scmp.ge.s32.totalorder %s1414_s7, %s3277_s5 }
 0x339   : >> { %s3330_s21 = smov (%p1423_p8, %s1422_s21), 0  ;;  %1416 = sbr.rel (!%p1413_p10) target bundleno = 822 (0x336), region = 147 }
 0x33a   : >> { %s1596_s22 = sshll.u32 %s3330_s21, 3  ;;  %s2335_s8 = smov %s3330_s21  }
 0x33b   : >> { %s1427_s6 = scalar_lea.vmem %s1408_s28, %s1596_s22 [#allocation6]   ;;  %s1428_s30 = scalar_lea.vmem %s1410_s29, %s1596_s22  }
 0x340 PF: > { %p14_p13 = scmp.ge.s32.totalorder %s2388_s17, 5   ;;  %s3319_s12 = smov %s2300_s13 }
 0x341   : > { %s3320_s13 = smov %s2304_s14  ;;  %s3321_s14 = smov %s2398_s20 }
 0x342   : > { %s3322_s15 = smov %s2388_s17  ;;  %16 = sbr.rel (!%p14_p13) target bundleno = 4 (0x4), region = 158 }
 0x349   :  { %1444 = vsyncpa [#allocation3], 1 }
 0x34a   :  { %1446 = vsyncpa [#allocation3 + $0x1], 1 }
 0x34b   :  { %1447 = vsyncpa [#allocation5], 1 }

</bundles_post_ra>
